<compile_context>
chip_gen: v6e
topology: v6e:2x2x1
jax: 0.10.0
libtpu: 0.0.40
codegen_flags: <defaults>
</compile_context>

<pallas_src>
import jax
import jax.numpy as jnp
from jax.experimental import pallas as pl
from jax.experimental.pallas import tpu as pltpu


def mlp_forward_kernel(x_ref, *refs):
    """refs = (w0, b0, w1, b1, ..., w6, b6, wf, bf, y_ref).

    Weights are bf16 (in_dim, out_dim); biases are f32 (1, out_dim);
    x_ref is a bf16 (TB, nItems+nUsers) batch tile; y_ref is f32 (TB, 1).
    """
    y_ref = refs[-1]
    wbs = refs[:-1]
    ws = wbs[0::2]
    bs = wbs[1::2]
    f32 = jnp.float32

    # Fused first layer: y0 = [userFC(u) ; itemFC(i)]  (block-diagonal weight,
    # no ReLU here — matches torch.cat of the two tower outputs).
    h = jnp.dot(x_ref[...], ws[0][...], preferred_element_type=f32) + bs[0][...]
    h = h.astype(jnp.bfloat16)

    # 6 x (Linear + ReLU)   (y1 .. y6), statically unrolled.
    for w, b in zip(ws[1:-1], bs[1:-1]):
        a = jnp.dot(h, w[...], preferred_element_type=f32) + b[...]
        h = jnp.maximum(a, 0.0).astype(jnp.bfloat16)

    # Final Linear(-> 1) + Sigmoid (exp on EUP, approx reciprocal on EUP).
    logits = jnp.dot(h, ws[-1][...], preferred_element_type=f32) + bs[-1][...]
    y_ref[...] = pl.reciprocal(1.0 + jnp.exp(-logits), approx=True)


def mlp_forward(user_input, item_input, params, label, *, tb=128):
    """user_input: (B, nItems) f32, item_input: (B, nUsers) f32, label: (B,) f32.

    params = (uw, ub, iw, ib, layer_ws, layer_bs, wf, bf) with every weight
    already transposed to (in_features, out_features) and biases shaped (1, out).
    Returns (scalar BCE loss, y of shape (B, 1)).
    """
    uw, ub, iw, ib, layer_ws, layer_bs, wf, bf = params
    nItems, half = uw.shape
    nUsers = iw.shape[0]
    B = user_input.shape[0]
    f_in = nItems + nUsers

    # --- wrapper-side param prep (done once) ------------------------------
    # Fuse userFC/itemFC + concat into one block-diagonal first layer.
    w0 = jnp.zeros((f_in, 2 * half), jnp.float32)
    w0 = w0.at[:nItems, :half].set(uw).at[nItems:, half:].set(iw)
    b0 = jnp.concatenate([ub, ib], axis=-1)                      # (1, 2*half)

    weights = [w0] + list(layer_ws) + [wf]
    biases = [b0] + list(layer_bs) + [bf]
    weights_bf16 = [w.astype(jnp.bfloat16) for w in weights]
    biases_f32 = [b.astype(jnp.float32).reshape(1, -1) for b in biases]

    # Pre-concatenated bf16 input tile source; pad batch to a multiple of tb.
    x = jnp.concatenate([user_input, item_input], axis=-1).astype(jnp.bfloat16)
    n_tiles = pl.cdiv(B, tb)
    b_pad = n_tiles * tb
    if b_pad != B:
        x = jnp.pad(x, ((0, b_pad - B), (0, 0)))

    # --- pallas_call -------------------------------------------------------
    flat_inputs = [x]
    in_specs = [pl.BlockSpec((tb, f_in), lambda i: (i, 0))]
    for w, b in zip(weights_bf16, biases_f32):
        flat_inputs += [w, b]
        # Weights/biases: whole-array blocks, same block for every grid step
        # -> stay resident in VMEM across the batch pipeline.
        in_specs.append(pl.BlockSpec(w.shape, lambda i: (0, 0)))
        in_specs.append(pl.BlockSpec(b.shape, lambda i: (0, 0)))

    y_pad = pl.pallas_call(
        mlp_forward_kernel,
        grid=(n_tiles,),
        out_shape=jax.ShapeDtypeStruct((b_pad, 1), jnp.float32),
        in_specs=in_specs,
        out_specs=pl.BlockSpec((tb, 1), lambda i: (i, 0)),
        compiler_params=pltpu.CompilerParams(
            dimension_semantics=("parallel",),
            vmem_limit_bytes=32 * 1024 * 1024,
        ),
    )(*flat_inputs)

    y = y_pad[:B]                                                # (B, 1), like self.y

    # BCELoss(mean) on the (tiny) y vector, PyTorch-style -100 log clamp.
    yc = y[:, 0]
    log_y = jnp.maximum(jnp.log(yc), -100.0)
    log_1my = jnp.maximum(jnp.log(1.0 - yc), -100.0)
    loss = -jnp.mean(label * log_y + (1.0 - label) * log_1my)
    return loss, y


def _init_linear(key, in_dim, out_dim):
    """Deterministic stand-in for nn.Linear init: U(-1/sqrt(in), 1/sqrt(in)).
    Returned W is already transposed to (in_dim, out_dim); b is (1, out_dim)."""
    kw, kb = jax.random.split(key)
    bound = 1.0 / jnp.sqrt(jnp.float32(in_dim))
    w = jax.random.uniform(kw, (in_dim, out_dim), jnp.float32, -bound, bound)
    b = jax.random.uniform(kb, (1, out_dim), jnp.float32, -bound, bound)
    return w, b


if __name__ == "__main__":
    key = jax.random.PRNGKey(0)

    # Small, forward-consistent shapes (B=200 exercises both padding and a
    # multi-step batch grid with tb=128).
    B = 200
    nUsers, nItems = 64, 64
    fcLayers = [64, 32, 32, 32, 32, 32, 32]   # 6 Linear+ReLU pairs, as in forward()
    half = fcLayers[0] // 2

    keys = jax.random.split(key, 16)

    # "registered buffers": interaction matrices
    userMatrix = jax.random.uniform(keys[0], (nUsers, nItems), jnp.float32)
    itemMatrix = jax.random.uniform(keys[1], (nItems, nUsers), jnp.float32)

    # indices + labels
    user = jax.random.randint(keys[2], (B,), 0, nUsers)
    item = jax.random.randint(keys[3], (B,), 0, nItems)
    label = jax.random.bernoulli(keys[4], 0.5, (B,)).astype(jnp.float32)

    # parameters (deterministic init in-script)
    uw, ub = _init_linear(keys[5], nItems, half)     # userFC
    iw, ib = _init_linear(keys[6], nUsers, half)     # itemFC
    layer_ws, layer_bs = [], []
    for li, (l1, l2) in enumerate(zip(fcLayers[:-1], fcLayers[1:])):
        w, b = _init_linear(keys[7 + li], l1, l2)
        layer_ws.append(w)
        layer_bs.append(b)
    wf, bf = _init_linear(keys[13], fcLayers[-1], 1)  # final Linear(->1)

    # glue: embedding-row gathers (plain JAX)
    userInput = userMatrix[user, :]   # (B, nItems)
    itemInput = itemMatrix[item, :]   # (B, nUsers)

    params = (uw, ub, iw, ib, layer_ws, layer_bs, wf, bf)
    loss, y = mlp_forward(userInput, itemInput, params, label, tb=128)
    jax.block_until_ready((loss, y))
    assert y.shape == (B, 1) and loss.shape == ()
    assert bool(jnp.all(jnp.isfinite(y))) and bool(jnp.isfinite(loss))
    print("KERNEL_OK")
</pallas_src>

<mosaic_0001>
module attributes {stable_mosaic.version = 11 : i64} {
  func.func @mlp_forward_kernel(%arg0: i32, %arg1: memref<128x128xbf16, #tpu.memory_space<vmem>>, %arg2: memref<128x64xbf16, #tpu.memory_space<vmem>>, %arg3: memref<1x64xf32, #tpu.memory_space<vmem>>, %arg4: memref<64x32xbf16, #tpu.memory_space<vmem>>, %arg5: memref<1x32xf32, #tpu.memory_space<vmem>>, %arg6: memref<32x32xbf16, #tpu.memory_space<vmem>>, %arg7: memref<1x32xf32, #tpu.memory_space<vmem>>, %arg8: memref<32x32xbf16, #tpu.memory_space<vmem>>, %arg9: memref<1x32xf32, #tpu.memory_space<vmem>>, %arg10: memref<32x32xbf16, #tpu.memory_space<vmem>>, %arg11: memref<1x32xf32, #tpu.memory_space<vmem>>, %arg12: memref<32x32xbf16, #tpu.memory_space<vmem>>, %arg13: memref<1x32xf32, #tpu.memory_space<vmem>>, %arg14: memref<32x32xbf16, #tpu.memory_space<vmem>>, %arg15: memref<1x32xf32, #tpu.memory_space<vmem>>, %arg16: memref<32x1xbf16, #tpu.memory_space<vmem>>, %arg17: memref<1x1xf32, #tpu.memory_space<vmem>>, %arg18: memref<128x1xf32, #tpu.memory_space<vmem>>) attributes {dimension_semantics = [#tpu.dimension_semantics<parallel>], iteration_bounds = array<i64: 2>, scalar_prefetch = 0 : i64, scratch_operands = 0 : i64, tpu.core_type = #tpu.core_type<tc>, window_params = [{transform_indices = @transform_0, window_bounds = array<i64: 128, 128>}, {pipeline_mode = #tpu.pipeline_mode<synchronous>, transform_indices = @transform_1, window_bounds = array<i64: 128, 64>}, {pipeline_mode = #tpu.pipeline_mode<synchronous>, transform_indices = @transform_2, window_bounds = array<i64: 1, 64>}, {pipeline_mode = #tpu.pipeline_mode<synchronous>, transform_indices = @transform_3, window_bounds = array<i64: 64, 32>}, {pipeline_mode = #tpu.pipeline_mode<synchronous>, transform_indices = @transform_4, window_bounds = array<i64: 1, 32>}, {pipeline_mode = #tpu.pipeline_mode<synchronous>, transform_indices = @transform_5, window_bounds = array<i64: 32, 32>}, {pipeline_mode = #tpu.pipeline_mode<synchronous>, transform_indices = @transform_6, window_bounds = array<i64: 1, 32>}, {pipeline_mode = #tpu.pipeline_mode<synchronous>, transform_indices = @transform_7, window_bounds = array<i64: 32, 32>}, {pipeline_mode = #tpu.pipeline_mode<synchronous>, transform_indices = @transform_8, window_bounds = array<i64: 1, 32>}, {pipeline_mode = #tpu.pipeline_mode<synchronous>, transform_indices = @transform_9, window_bounds = array<i64: 32, 32>}, {pipeline_mode = #tpu.pipeline_mode<synchronous>, transform_indices = @transform_10, window_bounds = array<i64: 1, 32>}, {pipeline_mode = #tpu.pipeline_mode<synchronous>, transform_indices = @transform_11, window_bounds = array<i64: 32, 32>}, {pipeline_mode = #tpu.pipeline_mode<synchronous>, transform_indices = @transform_12, window_bounds = array<i64: 1, 32>}, {pipeline_mode = #tpu.pipeline_mode<synchronous>, transform_indices = @transform_13, window_bounds = array<i64: 32, 32>}, {pipeline_mode = #tpu.pipeline_mode<synchronous>, transform_indices = @transform_14, window_bounds = array<i64: 1, 32>}, {pipeline_mode = #tpu.pipeline_mode<synchronous>, transform_indices = @transform_15, window_bounds = array<i64: 32, 1>}, {pipeline_mode = #tpu.pipeline_mode<synchronous>, transform_indices = @transform_16, window_bounds = array<i64: 1, 1>}, {transform_indices = @transform_17, window_bounds = array<i64: 128, 1>}]} {
    %c0 = arith.constant 0 : index
    %c0_0 = arith.constant 0 : index
    %0 = vector.load %arg1[%c0, %c0_0] : memref<128x128xbf16, #tpu.memory_space<vmem>>, vector<128x128xbf16>
    %c0_1 = arith.constant 0 : index
    %c0_2 = arith.constant 0 : index
    %1 = vector.load %arg2[%c0_1, %c0_2] : memref<128x64xbf16, #tpu.memory_space<vmem>>, vector<128x64xbf16>
    %cst = arith.constant dense<0.000000e+00> : vector<128x64xf32>
    %2 = tpu.matmul %0, %1, %cst {dimension_numbers = #tpu.dot_dimension_numbers<[1], [0], [0], [1], [0, 0, 1, 1], [], []>} : vector<128x128xbf16>, vector<128x64xbf16>, vector<128x64xf32> -> vector<128x64xf32>
    %c0_3 = arith.constant 0 : index
    %c0_4 = arith.constant 0 : index
    %3 = vector.load %arg3[%c0_3, %c0_4] : memref<1x64xf32, #tpu.memory_space<vmem>>, vector<1x64xf32>
    %4 = vector.broadcast %3 : vector<1x64xf32> to vector<128x64xf32>
    %5 = arith.addf %2, %4 : vector<128x64xf32>
    %6 = arith.truncf %5 : vector<128x64xf32> to vector<128x64xbf16>
    %c0_5 = arith.constant 0 : index
    %c0_6 = arith.constant 0 : index
    %7 = vector.load %arg4[%c0_5, %c0_6] : memref<64x32xbf16, #tpu.memory_space<vmem>>, vector<64x32xbf16>
    %cst_7 = arith.constant dense<0.000000e+00> : vector<128x32xf32>
    %8 = tpu.matmul %6, %7, %cst_7 {dimension_numbers = #tpu.dot_dimension_numbers<[1], [0], [0], [1], [0, 0, 1, 1], [], []>} : vector<128x64xbf16>, vector<64x32xbf16>, vector<128x32xf32> -> vector<128x32xf32>
    %c0_8 = arith.constant 0 : index
    %c0_9 = arith.constant 0 : index
    %9 = vector.load %arg5[%c0_8, %c0_9] : memref<1x32xf32, #tpu.memory_space<vmem>>, vector<1x32xf32>
    %10 = vector.broadcast %9 : vector<1x32xf32> to vector<128x32xf32>
    %11 = arith.addf %8, %10 : vector<128x32xf32>
    %cst_10 = arith.constant 0.000000e+00 : f32
    %12 = vector.broadcast %cst_10 : f32 to vector<128x32xf32>
    %13 = arith.maximumf %11, %12 : vector<128x32xf32>
    %14 = arith.truncf %13 : vector<128x32xf32> to vector<128x32xbf16>
    %c0_11 = arith.constant 0 : index
    %c0_12 = arith.constant 0 : index
    %15 = vector.load %arg6[%c0_11, %c0_12] : memref<32x32xbf16, #tpu.memory_space<vmem>>, vector<32x32xbf16>
    %cst_13 = arith.constant dense<0.000000e+00> : vector<128x32xf32>
    %16 = tpu.matmul %14, %15, %cst_13 {dimension_numbers = #tpu.dot_dimension_numbers<[1], [0], [0], [1], [0, 0, 1, 1], [], []>} : vector<128x32xbf16>, vector<32x32xbf16>, vector<128x32xf32> -> vector<128x32xf32>
    %c0_14 = arith.constant 0 : index
    %c0_15 = arith.constant 0 : index
    %17 = vector.load %arg7[%c0_14, %c0_15] : memref<1x32xf32, #tpu.memory_space<vmem>>, vector<1x32xf32>
    %18 = vector.broadcast %17 : vector<1x32xf32> to vector<128x32xf32>
    %19 = arith.addf %16, %18 : vector<128x32xf32>
    %cst_16 = arith.constant 0.000000e+00 : f32
    %20 = vector.broadcast %cst_16 : f32 to vector<128x32xf32>
    %21 = arith.maximumf %19, %20 : vector<128x32xf32>
    %22 = arith.truncf %21 : vector<128x32xf32> to vector<128x32xbf16>
    %c0_17 = arith.constant 0 : index
    %c0_18 = arith.constant 0 : index
    %23 = vector.load %arg8[%c0_17, %c0_18] : memref<32x32xbf16, #tpu.memory_space<vmem>>, vector<32x32xbf16>
    %cst_19 = arith.constant dense<0.000000e+00> : vector<128x32xf32>
    %24 = tpu.matmul %22, %23, %cst_19 {dimension_numbers = #tpu.dot_dimension_numbers<[1], [0], [0], [1], [0, 0, 1, 1], [], []>} : vector<128x32xbf16>, vector<32x32xbf16>, vector<128x32xf32> -> vector<128x32xf32>
    %c0_20 = arith.constant 0 : index
    %c0_21 = arith.constant 0 : index
    %25 = vector.load %arg9[%c0_20, %c0_21] : memref<1x32xf32, #tpu.memory_space<vmem>>, vector<1x32xf32>
    %26 = vector.broadcast %25 : vector<1x32xf32> to vector<128x32xf32>
    %27 = arith.addf %24, %26 : vector<128x32xf32>
    %cst_22 = arith.constant 0.000000e+00 : f32
    %28 = vector.broadcast %cst_22 : f32 to vector<128x32xf32>
    %29 = arith.maximumf %27, %28 : vector<128x32xf32>
    %30 = arith.truncf %29 : vector<128x32xf32> to vector<128x32xbf16>
    %c0_23 = arith.constant 0 : index
    %c0_24 = arith.constant 0 : index
    %31 = vector.load %arg10[%c0_23, %c0_24] : memref<32x32xbf16, #tpu.memory_space<vmem>>, vector<32x32xbf16>
    %cst_25 = arith.constant dense<0.000000e+00> : vector<128x32xf32>
    %32 = tpu.matmul %30, %31, %cst_25 {dimension_numbers = #tpu.dot_dimension_numbers<[1], [0], [0], [1], [0, 0, 1, 1], [], []>} : vector<128x32xbf16>, vector<32x32xbf16>, vector<128x32xf32> -> vector<128x32xf32>
    %c0_26 = arith.constant 0 : index
    %c0_27 = arith.constant 0 : index
    %33 = vector.load %arg11[%c0_26, %c0_27] : memref<1x32xf32, #tpu.memory_space<vmem>>, vector<1x32xf32>
    %34 = vector.broadcast %33 : vector<1x32xf32> to vector<128x32xf32>
    %35 = arith.addf %32, %34 : vector<128x32xf32>
    %cst_28 = arith.constant 0.000000e+00 : f32
    %36 = vector.broadcast %cst_28 : f32 to vector<128x32xf32>
    %37 = arith.maximumf %35, %36 : vector<128x32xf32>
    %38 = arith.truncf %37 : vector<128x32xf32> to vector<128x32xbf16>
    %c0_29 = arith.constant 0 : index
    %c0_30 = arith.constant 0 : index
    %39 = vector.load %arg12[%c0_29, %c0_30] : memref<32x32xbf16, #tpu.memory_space<vmem>>, vector<32x32xbf16>
    %cst_31 = arith.constant dense<0.000000e+00> : vector<128x32xf32>
    %40 = tpu.matmul %38, %39, %cst_31 {dimension_numbers = #tpu.dot_dimension_numbers<[1], [0], [0], [1], [0, 0, 1, 1], [], []>} : vector<128x32xbf16>, vector<32x32xbf16>, vector<128x32xf32> -> vector<128x32xf32>
    %c0_32 = arith.constant 0 : index
    %c0_33 = arith.constant 0 : index
    %41 = vector.load %arg13[%c0_32, %c0_33] : memref<1x32xf32, #tpu.memory_space<vmem>>, vector<1x32xf32>
    %42 = vector.broadcast %41 : vector<1x32xf32> to vector<128x32xf32>
    %43 = arith.addf %40, %42 : vector<128x32xf32>
    %cst_34 = arith.constant 0.000000e+00 : f32
    %44 = vector.broadcast %cst_34 : f32 to vector<128x32xf32>
    %45 = arith.maximumf %43, %44 : vector<128x32xf32>
    %46 = arith.truncf %45 : vector<128x32xf32> to vector<128x32xbf16>
    %c0_35 = arith.constant 0 : index
    %c0_36 = arith.constant 0 : index
    %47 = vector.load %arg14[%c0_35, %c0_36] : memref<32x32xbf16, #tpu.memory_space<vmem>>, vector<32x32xbf16>
    %cst_37 = arith.constant dense<0.000000e+00> : vector<128x32xf32>
    %48 = tpu.matmul %46, %47, %cst_37 {dimension_numbers = #tpu.dot_dimension_numbers<[1], [0], [0], [1], [0, 0, 1, 1], [], []>} : vector<128x32xbf16>, vector<32x32xbf16>, vector<128x32xf32> -> vector<128x32xf32>
    %c0_38 = arith.constant 0 : index
    %c0_39 = arith.constant 0 : index
    %49 = vector.load %arg15[%c0_38, %c0_39] : memref<1x32xf32, #tpu.memory_space<vmem>>, vector<1x32xf32>
    %50 = vector.broadcast %49 : vector<1x32xf32> to vector<128x32xf32>
    %51 = arith.addf %48, %50 : vector<128x32xf32>
    %cst_40 = arith.constant 0.000000e+00 : f32
    %52 = vector.broadcast %cst_40 : f32 to vector<128x32xf32>
    %53 = arith.maximumf %51, %52 : vector<128x32xf32>
    %54 = arith.truncf %53 : vector<128x32xf32> to vector<128x32xbf16>
    %c0_41 = arith.constant 0 : index
    %c0_42 = arith.constant 0 : index
    %55 = vector.load %arg16[%c0_41, %c0_42] : memref<32x1xbf16, #tpu.memory_space<vmem>>, vector<32x1xbf16>
    %cst_43 = arith.constant dense<0.000000e+00> : vector<128x1xf32>
    %56 = tpu.matmul %54, %55, %cst_43 {dimension_numbers = #tpu.dot_dimension_numbers<[1], [0], [0], [1], [0, 0, 1, 1], [], []>} : vector<128x32xbf16>, vector<32x1xbf16>, vector<128x1xf32> -> vector<128x1xf32>
    %c0_44 = arith.constant 0 : index
    %c0_45 = arith.constant 0 : index
    %57 = vector.load %arg17[%c0_44, %c0_45] : memref<1x1xf32, #tpu.memory_space<vmem>>, vector<1x1xf32>
    %58 = vector.broadcast %57 : vector<1x1xf32> to vector<128x1xf32>
    %59 = arith.addf %56, %58 : vector<128x1xf32>
    %cst_46 = arith.constant 0.000000e+00 : f32
    %60 = vector.broadcast %cst_46 : f32 to vector<128x1xf32>
    %61 = arith.subf %60, %59 : vector<128x1xf32>
    %62 = math.exp %61 : vector<128x1xf32>
    %cst_47 = arith.constant 1.000000e+00 : f32
    %63 = vector.broadcast %cst_47 : f32 to vector<128x1xf32>
    %64 = arith.addf %63, %62 : vector<128x1xf32>
    %65 = tpu.reciprocal %64 {approx = true} : vector<128x1xf32> -> vector<128x1xf32>
    %c0_48 = arith.constant 0 : index
    %c0_49 = arith.constant 0 : index
    %66 = vector.load %arg18[%c0_48, %c0_49] : memref<128x1xf32, #tpu.memory_space<vmem>>, vector<128x1xf32>
    tpu.vector_store %arg18[%c0_48, %c0_49], %65 {strides = array<i32>} : memref<128x1xf32, #tpu.memory_space<vmem>>, vector<128x1xf32>,
    return
  }
  func.func @transform_0(%arg0: i32) -> (i32, i32) {
    %c0_i32 = arith.constant 0 : i32
    %c0_i32_0 = arith.constant 0 : i32
    return %arg0, %c0_i32 : i32, i32
  }
  func.func @transform_1(%arg0: i32) -> (i32, i32) {
    %c0_i32 = arith.constant 0 : i32
    %c0_i32_0 = arith.constant 0 : i32
    %c0_i32_1 = arith.constant 0 : i32
    return %c0_i32, %c0_i32_0 : i32, i32
  }
  func.func @transform_2(%arg0: i32) -> (i32, i32) {
    %c0_i32 = arith.constant 0 : i32
    %c0_i32_0 = arith.constant 0 : i32
    %c0_i32_1 = arith.constant 0 : i32
    return %c0_i32, %c0_i32_0 : i32, i32
  }
  func.func @transform_3(%arg0: i32) -> (i32, i32) {
    %c0_i32 = arith.constant 0 : i32
    %c0_i32_0 = arith.constant 0 : i32
    %c0_i32_1 = arith.constant 0 : i32
    return %c0_i32, %c0_i32_0 : i32, i32
  }
  func.func @transform_4(%arg0: i32) -> (i32, i32) {
    %c0_i32 = arith.constant 0 : i32
    %c0_i32_0 = arith.constant 0 : i32
    %c0_i32_1 = arith.constant 0 : i32
    return %c0_i32, %c0_i32_0 : i32, i32
  }
  func.func @transform_5(%arg0: i32) -> (i32, i32) {
    %c0_i32 = arith.constant 0 : i32
    %c0_i32_0 = arith.constant 0 : i32
    %c0_i32_1 = arith.constant 0 : i32
    return %c0_i32, %c0_i32_0 : i32, i32
  }
  func.func @transform_6(%arg0: i32) -> (i32, i32) {
    %c0_i32 = arith.constant 0 : i32
    %c0_i32_0 = arith.constant 0 : i32
    %c0_i32_1 = arith.constant 0 : i32
    return %c0_i32, %c0_i32_0 : i32, i32
  }
  func.func @transform_7(%arg0: i32) -> (i32, i32) {
    %c0_i32 = arith.constant 0 : i32
    %c0_i32_0 = arith.constant 0 : i32
    %c0_i32_1 = arith.constant 0 : i32
    return %c0_i32, %c0_i32_0 : i32, i32
  }
  func.func @transform_8(%arg0: i32) -> (i32, i32) {
    %c0_i32 = arith.constant 0 : i32
    %c0_i32_0 = arith.constant 0 : i32
    %c0_i32_1 = arith.constant 0 : i32
    return %c0_i32, %c0_i32_0 : i32, i32
  }
  func.func @transform_9(%arg0: i32) -> (i32, i32) {
    %c0_i32 = arith.constant 0 : i32
    %c0_i32_0 = arith.constant 0 : i32
    %c0_i32_1 = arith.constant 0 : i32
    return %c0_i32, %c0_i32_0 : i32, i32
  }
  func.func @transform_10(%arg0: i32) -> (i32, i32) {
    %c0_i32 = arith.constant 0 : i32
    %c0_i32_0 = arith.constant 0 : i32
    %c0_i32_1 = arith.constant 0 : i32
    return %c0_i32, %c0_i32_0 : i32, i32
  }
  func.func @transform_11(%arg0: i32) -> (i32, i32) {
    %c0_i32 = arith.constant 0 : i32
    %c0_i32_0 = arith.constant 0 : i32
    %c0_i32_1 = arith.constant 0 : i32
    return %c0_i32, %c0_i32_0 : i32, i32
  }
  func.func @transform_12(%arg0: i32) -> (i32, i32) {
    %c0_i32 = arith.constant 0 : i32
    %c0_i32_0 = arith.constant 0 : i32
    %c0_i32_1 = arith.constant 0 : i32
    return %c0_i32, %c0_i32_0 : i32, i32
  }
  func.func @transform_13(%arg0: i32) -> (i32, i32) {
    %c0_i32 = arith.constant 0 : i32
    %c0_i32_0 = arith.constant 0 : i32
    %c0_i32_1 = arith.constant 0 : i32
    return %c0_i32, %c0_i32_0 : i32, i32
  }
  func.func @transform_14(%arg0: i32) -> (i32, i32) {
    %c0_i32 = arith.constant 0 : i32
    %c0_i32_0 = arith.constant 0 : i32
    %c0_i32_1 = arith.constant 0 : i32
    return %c0_i32, %c0_i32_0 : i32, i32
  }
  func.func @transform_15(%arg0: i32) -> (i32, i32) {
    %c0_i32 = arith.constant 0 : i32
    %c0_i32_0 = arith.constant 0 : i32
    %c0_i32_1 = arith.constant 0 : i32
    return %c0_i32, %c0_i32_0 : i32, i32
  }
  func.func @transform_16(%arg0: i32) -> (i32, i32) {
    %c0_i32 = arith.constant 0 : i32
    %c0_i32_0 = arith.constant 0 : i32
    %c0_i32_1 = arith.constant 0 : i32
    return %c0_i32, %c0_i32_0 : i32, i32
  }
  func.func @transform_17(%arg0: i32) -> (i32, i32) {
    %c0_i32 = arith.constant 0 : i32
    %c0_i32_0 = arith.constant 0 : i32
    return %arg0, %c0_i32 : i32, i32
  }
}

</mosaic_0001>

<bundles_post_ra>
// kernel: tpu_custom_call.1
= control target key start
LH: loop header
LB: loop body
LE: loop exit
PB: predicated region body
PF: predicated region fallthrough
CT: control target
= control target key end

     0   :  { %s3478_s0 = inlined_call_operand.vmem [shape: bf16[256,128], index: 0, kind: input, shape index: {}]   ;;  %s3479_s1 = inlined_call_operand.vmem [shape: bf16[128,64], index: 1, kind: input, shape index: {}]   ;;  %s3480_s2 = inlined_call_operand.vmem [shape: f32[1,64], index: 2, kind: input, shape index: {}]   ;;  %s3481_s3 = inlined_call_operand.vmem [shape: bf16[64,32], index: 3, kind: input, shape index: {}]   ;;  %s3482_s4 = inlined_call_operand.hbm [shape: f32[1,32], index: 4, kind: input, shape index: {}]   ;;  %s3483_s5 = inlined_call_operand.hbm [shape: bf16[32,32], index: 5, kind: input, shape index: {}]   ;;  %s3484_s6 = inlined_call_operand.hbm [shape: f32[1,32], index: 6, kind: input, shape index: {}]   ;;  %s3485_s7 = inlined_call_operand.hbm [shape: bf16[32,32], index: 7, kind: input, shape index: {}]   ;;  %s3486_s8 = inlined_call_operand.hbm [shape: f32[1,32], index: 8, kind: input, shape index: {}]   ;;  %s3487_s9 = inlined_call_operand.vmem [shape: bf16[32,32], index: 9, kind: input, shape index: {}]   ;;  %s3488_s10 = inlined_call_operand.vmem [shape: f32[1,32], index: 10, kind: input, shape index: {}]   ;;  %s3489_s11 = inlined_call_operand.hbm [shape: bf16[32,32], index: 11, kind: input, shape index: {}]   ;;  %s3490_s12 = inlined_call_operand.vmem [shape: f32[1,32], index: 12, kind: input, shape index: {}]   ;;  %s3491_s13 = inlined_call_operand.hbm [shape: bf16[32,32], index: 13, kind: input, shape index: {}]   ;;  %s3492_s14 = inlined_call_operand.vmem [shape: f32[1,32], index: 14, kind: input, shape index: {}]   ;;  %s3493_s15 = inlined_call_operand.vmem [shape: bf16[32,1], index: 15, kind: input, shape index: {}]   ;;  %s3494_s16 = inlined_call_operand.<no memory space> [shape: f32[1,1], index: 16, kind: input, shape index: {}]   ;;  %s3495_s17 = inlined_call_operand.vmem [shape: f32[256,1], index: 17, kind: output, shape index: {}]  }
   0x1   :  { %3501 = sst [smem:[#allocation18_spill]] %s3478_s0  ;;  %v22_v0 = vstv %s3494_s16 }
   0x2   :  { %3502 = sst [smem:[#allocation19_spill]] %s3479_s1  ;;  %23 = vst [vmem:[#allocation2] sm:$0x1] %v22_v0 }
   0x3   :  { %24 = vsyncpa [#allocation4], 0 }
   0x4   :  { %25 = vsyncpa [#allocation6], 0 }
   0x5   :  { %26 = vsyncpa [#allocation9], 0 }
   0x6   :  { %27 = vsyncpa [#allocation12], 0  ;;  %s3157_s26 = smov 0  }
   0x7 LB: > { %s3055_s27 = smov [#allocation5]   ;;  %s3497_s29 = sadd.s32 4294967295, %s3053_s26   ;;  %s3053_s26 = sphi %s3157_s26, %s33_s26  }
   0x8   : > { %s458_s28 = sshll.u32 %s3055_s27, 4  ;;  %p2285_p0 = scmp.ge.s32.totalorder %s3053_s26, 1  ;;  %s459_s28 = int_to_ptr.vmem [resolvable:$true] %s458_s28 }
   0x9   : > { %p426_p1 = scmp.lt.s32.totalorder %s3053_s26, 3  ;;  %p3167_p2 = scmp.eq.s32.totalorder %s3497_s29, 0 }
   0xa   : > { %s3056_s30 = smov [#allocation8]   ;;  %s3057_s1 = smov [#allocation11]  }
   0xb   : > { %s3503_s16 = scalar_select %p3167_p2, 1, 0 }
   0xc   : > { %p3171_p3 = pnand %p2285_p0, %p426_p1  ;;  %s482_s18 = sshll.u32 %s3056_s30, 4  ;;  %s3177_s18 = int_to_ptr.vmem [resolvable:$true] %s482_s18 }
   0xd   : > { %s512_s20 = sshll.u32 %s3057_s1, 4  ;;  %s3058_s21 = smov [#allocation3]   ;;  %s3185_s20 = int_to_ptr.vmem [resolvable:$true] %s512_s20 }
   0xe   : > { %p2700_p4 = pneg %p3171_p3  ;;  %s3187_s22 = sshll.u32 %s3058_s21, 4  ;;  %s449_s22 = int_to_ptr.vmem [resolvable:$true] %s3187_s22 }
   0xf   : > { %s2860_s24 = scalar_lea.vmem %s459_s28, 256  ;;  %p2868_p10 = scmp.lt.s32.totalorder %s459_s28, %s459_s28 }
  0x10   : > { %p3181_p5 = pnand %p3167_p2, %p2700_p4  ;;  %p2861_p7 = scmp.ne.s32.totalorder %s459_s28, %s2860_s24 }
  0x11   : > { %p2869_p11 = scmp.lt.s32.totalorder %s2860_s24, %s2860_s24 }
  0x12   : > { %p3191_p6 = pneg %p3181_p5 }
  0x13   : > { %p2870_p12 = por %p2869_p11, %p2868_p10 }
  0x14   : > { %p2863_p8 = pnand %p2861_p7, %p3191_p6 }
  0x16   : > { %p2864_p9 = pneg %p2863_p8 }
  0x18   : > { %p2871_p13 = pnand %p2870_p12, %p2864_p9 }
  0x1a   : > { %2874 = shalt.err (!%p2871_p13)
}
  0x1b   : > { %s3498_s25 = smov 64   ;;  %s3060_s27 = smov 4  }
  0x1c   : > { %2706 = dma.hbm_to_vmem [thread:$0]  (!%p3181_p5), %s3483_s5, 256, %s459_s28, [#allocation6], %s3498_s25, %s3498_s25, %s3060_s27  }
  0x1d   : > { %s2886_s21 = scalar_lea.vmem %s3177_s18, 256  ;;  %p2894_p7 = scmp.lt.s32.totalorder %s3177_s18, %s3177_s18 }
  0x1e   : > { %p2887_p0 = scmp.ne.s32.totalorder %s3177_s18, %s2886_s21  ;;  %p2895_p8 = scmp.lt.s32.totalorder %s2886_s21, %s2886_s21 }
  0x20   : > { %p2889_p1 = pnand %p2887_p0, %p3191_p6  ;;  %p2896_p9 = por %p2895_p8, %p2894_p7 }
  0x22   : > { %p2890_p4 = pneg %p2889_p1 }
  0x24   : > { %p2897_p10 = pnand %p2896_p9, %p2890_p4 }
  0x26   : > { %2900 = shalt.err (!%p2897_p10)
}
  0x27   : > { %2712 = dma.hbm_to_vmem [thread:$0]  (!%p3181_p5), %s3485_s7, 256, %s3177_s18, [#allocation9], %s3498_s25, %s3498_s25, %s3060_s27  }
  0x28   : > { %s2912_s28 = scalar_lea.vmem %s3185_s20, 256  ;;  %p2920_p0 = scmp.lt.s32.totalorder %s3185_s20, %s3185_s20 }
  0x29   : > { %p2913_p11 = scmp.ne.s32.totalorder %s3185_s20, %s2912_s28  ;;  %p2921_p1 = scmp.lt.s32.totalorder %s2912_s28, %s2912_s28 }
  0x2b   : > { %p2915_p12 = pnand %p2913_p11, %p3191_p6  ;;  %p2922_p4 = por %p2921_p1, %p2920_p0 }
  0x2d   : > { %p2916_p13 = pneg %p2915_p12 }
  0x2f   : > { %p2923_p7 = pnand %p2922_p4, %p2916_p13 }
  0x31   : > { %2926 = shalt.err (!%p2923_p7)
}
  0x32   : > { %2718 = dma.hbm_to_vmem [thread:$0]  (!%p3181_p5), %s3489_s11, 256, %s3185_s20, [#allocation12], %s3498_s25, %s3498_s25, %s3060_s27  }
  0x33   : > { %s2938_s18 = scalar_lea.vmem %s449_s22, 16  ;;  %s2945_s24 = scalar_lea.vmem %s449_s22, 32 }
  0x34   : > { %p2939_p8 = scmp.ne.s32.totalorder %s449_s22, %s2938_s18  ;;  %p2946_p11 = scmp.lt.s32.totalorder %s449_s22, %s449_s22 }
  0x35   : > { %p2947_p12 = scmp.lt.s32.totalorder %s2945_s24, %s2938_s18 }
  0x36   : > { %p2941_p9 = pnand %p2939_p8, %p3191_p6 }
  0x37   : > { %p2948_p13 = por %p2947_p12, %p2946_p11 }
  0x38   : > { %p2942_p10 = pneg %p2941_p9 }
  0x3a   : > { %p2949_p0 = pnand %p2948_p13, %p2942_p10 }
  0x3c   : > { %2952 = shalt.err (!%p2949_p0)
}
  0x3d   : > { %2703 = dma.hbm_to_vmem [thread:$0]  (!%p3181_p5), %s3482_s4, 16, %s449_s22, [#allocation4]  }
  0x3e   : > { %s3061_s20 = smov [#allocation7]   ;;  %s3062_s21 = smov [#allocation10]  }
  0x3f   : > { %s472_s1 = sshll.u32 %s3061_s20, 4  ;;  %s496_s29 = sshll.u32 %s3062_s21, 4  ;;  %s473_s1 = int_to_ptr.vmem [resolvable:$true] %s472_s1  ;;  %s497_s29 = int_to_ptr.vmem [resolvable:$true] %s496_s29 }
  0x40   : > { %s2964_s25 = scalar_lea.vmem %s473_s1, 16  ;;  %s2971_s18 = scalar_lea.vmem %s473_s1, 32 }
  0x41   : > { %p2965_p1 = scmp.ne.s32.totalorder %s473_s1, %s2964_s25  ;;  %p2972_p8 = scmp.lt.s32.totalorder %s473_s1, %s473_s1 }
  0x42   : > { %p2973_p9 = scmp.lt.s32.totalorder %s2971_s18, %s2964_s25 }
  0x43   : > { %p2967_p4 = pnand %p2965_p1, %p3191_p6 }
  0x44   : > { %p2974_p10 = por %p2973_p9, %p2972_p8 }
  0x45   : > { %p2968_p7 = pneg %p2967_p4 }
  0x47   : > { %p2975_p11 = pnand %p2974_p10, %p2968_p7 }
  0x49   : > { %2978 = shalt.err (!%p2975_p11)
}
  0x4a   : > { %2709 = dma.hbm_to_vmem [thread:$0]  (!%p3181_p5), %s3484_s6, 16, %s473_s1, [#allocation6]  }
  0x4b   : > { %s2990_s30 = scalar_lea.vmem %s497_s29, 16  ;;  %s2997_s28 = scalar_lea.vmem %s497_s29, 32 }
  0x4c   : > { %p2991_p12 = scmp.ne.s32.totalorder %s497_s29, %s2990_s30  ;;  %p2998_p1 = scmp.lt.s32.totalorder %s497_s29, %s497_s29 }
  0x4d   : > { %p2999_p4 = scmp.lt.s32.totalorder %s2997_s28, %s2990_s30 }
  0x4e   : > { %p2993_p13 = pnand %p2991_p12, %p3191_p6 }
  0x4f   : > { %p3000_p2 = por %p2999_p4, %p2998_p1 }
  0x50   : > { %p2994_p0 = pneg %p2993_p13 }
  0x52   : > { %p3001_p8 = pnand %p3000_p2, %p2994_p0 }
  0x54   : > { %3004 = shalt.err (!%p3001_p8)
}
  0x55   : > { %2715 = dma.hbm_to_vmem [thread:$0]  (!%p3181_p5), %s3486_s8, 16, %s497_s29, [#allocation9]  }
  0x56   : > { %s3063_s1 = smov [#allocation13]  }
  0x57   : > { %s528_s21 = sshll.u32 %s3063_s1, 4  ;;  %s529_s21 = int_to_ptr.vmem [resolvable:$true] %s528_s21 }
  0x58   : > { %s3016_s18 = scalar_lea.vmem %s529_s21, 256  ;;  %p3024_p11 = scmp.lt.s32.totalorder %s529_s21, %s529_s21 }
  0x59   : > { %p3017_p7 = scmp.ne.s32.totalorder %s529_s21, %s3016_s18  ;;  %p3025_p12 = scmp.lt.s32.totalorder %s3016_s18, %s3016_s18 }
  0x5b   : > { %p3019_p9 = pnand %p3017_p7, %p3191_p6  ;;  %p3026_p13 = por %p3025_p12, %p3024_p11 }
  0x5d   : > { %p3020_p10 = pneg %p3019_p9 }
  0x5f   : > { %p3027_p2 = pnand %p3026_p13, %p3020_p10 }
  0x61   : > { %3030 = shalt.err (!%p3027_p2)
}
  0x62   : > { %s3507_s24 = smov 64   ;;  %562 = sbr.rel (%p3171_p3) target bundleno = 1850 (0x73a), region = 88 }
  0x63   : > { %2721 = dma.hbm_to_vmem [thread:$0]  (!%p3181_p5), %s3491_s13, 256, %s529_s21, [#allocation12], %s3507_s24, %s3507_s24, %s3060_s27  }
  0x64   : > { %p3508_p6 = scmp.ne.s32.totalorder (!%p3171_p3), %s3503_s16, 0 }
  0x67   : > { %3036 = dma.done.wait (%p3508_p6), [#allocation4], 16  }
  0x68   : > { %3038 = vsyncadd (%p3508_p6), [#allocation4], 4294967280 }
  0x69   : > { %3040 = dma.done.wait (%p3508_p6), [#allocation6], 272  }
  0x6a   : > { %3042 = vsyncadd (%p3508_p6), [#allocation6], 4294967024 }
  0x6b   : > { %3044 = dma.done.wait (%p3508_p6), [#allocation9], 272  }
  0x6c   : > { %3046 = vsyncadd (%p3508_p6), [#allocation9], 4294967024 }
  0x6d   : > { %3048 = dma.done.wait (%p3508_p6), [#allocation12], 512  }
  0x6e   : > { %3050 = vsyncadd (%p3508_p6), [#allocation12], 4294966784  ;;  %s3509_s0 = sadd.s32 4294967295, %s3053_s26   ;;  %s3510_s30 = sld [smem:[#allocation19_spill]]  ;;  %v2769_v8 = vld [vmem:[%s3481_s3 + $0x18] sm:$0xff]   ;;  %v2770_v18 = vld [vmem:[%s3481_s3 + $0x10] sm:$0xff]  }
  0x6f   : > { %s2302_s19 = sshll.u32 %s3509_s0, 4  ;;  %s3511_s24 = sld [smem:[#allocation18_spill]]  ;;  %2524 = vmatprep.subr.bf16.mxu1 %v2769_v8  ;;  %v2771_v19 = vld [vmem:[%s3481_s3 + $0x8] sm:$0xff]   ;;  %v2772_v20 = vld [vmem:[%s3481_s3] sm:$0xff]   ;;  %vm930_vm0 = vcmask 523264   ;;  %vm1099_vm1 = vcmask 261120  }
  0x70   : > { %p639_p3 = scmp.lt.s32.totalorder %s2302_s19, 31  ;;  %2525 = vmatpush3.bf16.msra.mxu1 %v2769_v8  ;;  %v2773_v21 = vld [vmem:[#allocation5 + $0x8] sm:$0xff]   ;;  %v2306_v25 = vld [vmem:[%s3480_s2] ss:$0 sm:$0xff]  ;;  %v2774_v35 = vld [vmem:[#allocation5] sm:$0xff]   ;;  %vm2141_vm2 = vcmask 7168  }
  0x71   : > { %2526 = vmatprep.subr.bf16.mxu1 %v2770_v18  ;;  %v2775_v0 = vld [vmem:[#allocation8 + $0x8] sm:$0xff]  }
  0x72   : > { %s3513_s19 = smov (!%p639_p3, %s2302_s19), 31 }
  0x73   : > { %s2303_s20 = sshll.u32 %s3513_s19, 2  ;;  %s2305_s1 = sshll.u32 %s3513_s19, 3 }
  0x74   : > { %v2753_v1 = vld [vmem:[%s3510_s30 + $0x38] sm:$0xff]   ;;  %v2754_v2 = vld [vmem:[%s3510_s30 + $0x30] sm:$0xff]   ;;  %v2755_v3 = vld [vmem:[%s3510_s30 + $0x28] sm:$0xff]   ;;  %2527 = vmatpush3.bf16.msra.mxu1 %v2770_v18 }
  0x75   : > { %2492 = vmatprep.subr.bf16.mxu0 %v2753_v1  ;;  %s3302_s22 = scalar_lea.vmem %s3511_s24, %s2303_s20  ;;  %v2756_v4 = vld [vmem:[%s3510_s30 + $0x20] sm:$0xff]   ;;  %v2757_v6 = vld [vmem:[%s3510_s30 + $0x18] sm:$0xff]   ;;  %v2758_v7 = vld [vmem:[%s3510_s30 + $0x10] sm:$0xff]   ;;  %2528 = vmatprep.subr.bf16.mxu1 %v2771_v19  ;;  %s3441_s24 = scalar_lea.vmem %s3495_s17, %s2305_s1 }
  0x76   : > { %2493 = vmatpush3.bf16.msra.mxu0 %v2753_v1  ;;  %v2761_v5 = vld [vmem:[%s3302_s22] sm:$0xff]   ;;  %v2759_v9 = vld [vmem:[%s3510_s30 + $0x8] sm:$0xff]   ;;  %v2763_v12 = vld [vmem:[%s3302_s22 + $0x10] sm:$0xff]  }
  0x77   : > { %2494 = vmatprep.subr.bf16.mxu0 %v2754_v2  ;;  %2508 = vmatprep.mubr.bf16.mxu0 %v2761_v5  ;;  %v2760_v10 = vld [vmem:[%s3510_s30] sm:$0xff]   ;;  %v2762_v11 = vld [vmem:[%s3302_s22 + $0x8] sm:$0xff]   ;;  %v2764_v13 = vld [vmem:[%s3302_s22 + $0x18] sm:$0xff]  }
  0x78   : > { %v2765_v14 = vld [vmem:[%s3302_s22 + $0x20] sm:$0xff]   ;;  %v2766_v15 = vld [vmem:[%s3302_s22 + $0x28] sm:$0xff]   ;;  %v2767_v16 = vld [vmem:[%s3302_s22 + $0x30] sm:$0xff]   ;;  %2529 = vmatpush3.bf16.msra.mxu1 %v2771_v19 }
  0x79   : > { %v2768_v17 = vld [vmem:[%s3302_s22 + $0x38] sm:$0xff]   ;;  %2530 = vmatprep.subr.bf16.mxu1 %v2772_v20 }
  0x7a   : > { %2495 = vmatpush3.bf16.msra.mxu0 %v2754_v2  ;;  %v2776_v1 = vld [vmem:[#allocation8] sm:$0xff]  }
  0x7b   : > { %2496 = vmatprep.subr.bf16.mxu0 %v2755_v3 }
  0x7c   : > { %2531 = vmatpush3.bf16.msra.mxu1 %v2772_v20 }
  0x7d   : > { %2548 = vmatprep.subr.bf16.mxu1 %v2773_v21 }
  0x7e   : > { %2497 = vmatpush3.bf16.msra.mxu0 %v2755_v3 }
  0x7f   : > { %2498 = vmatprep.subr.bf16.mxu0 %v2756_v4 }
  0x82   : > { %2499 = vmatpush3.bf16.msra.mxu0 %v2756_v4  ;;  %v2323_v4 = vld [vmem:[#allocation3] ss:$0 sm:$0xff] }
  0x83   : > { %2500 = vmatprep.subr.bf16.mxu0 %v2757_v6 }
  0x86   : > { %2501 = vmatpush3.bf16.msra.mxu0 %v2757_v6 }
  0x87   : > { %2502 = vmatprep.subr.bf16.mxu0 %v2758_v7 }
  0x8a   : > { %2503 = vmatpush3.bf16.msra.mxu0 %v2758_v7 }
  0x8b   : > { %2504 = vmatprep.subr.bf16.mxu0 %v2759_v9 }
  0x8e   : > { %2505 = vmatpush3.bf16.msra.mxu0 %v2759_v9 }
  0x8f   : > { %2506 = vmatprep.subr.bf16.mxu0 %v2760_v10 }
  0x92   : > { %2507 = vmatpush3.bf16.msra.mxu0 %v2760_v10 }
  0x93   : > { %2568 = vmatprep.subr.bf16.mxu0 %v2775_v0 }
  0x95   : > { %2509 = vmatmul.mubr.bf16.vlgmr.msra.gmra.mxu0 %v2762_v11 }
  0x96   : > { %2512 = vmatprep.mubr.bf16.mxu0 %v2763_v12  ;;  %2569 = vmatpush3.bf16.msra.mxu0 %v2775_v0 }
  0x97   : > { %2570 = vmatprep.subr.bf16.mxu0 %v2776_v1 }
  0x9a   : > { %2571 = vmatpush3.bf16.msra.mxu0 %v2776_v1 }
  0x9d   : > { %2513 = vmatmul.mubr.bf16.gmra.mxu0 %v2764_v13 }
  0x9e   : > { %2516 = vmatprep.mubr.bf16.mxu0 %v2765_v14 }
  0xa5   : > { %2517 = vmatmul.mubr.bf16.gmra.mxu0 %v2766_v15 }
  0xa6   : > { %2520 = vmatprep.mubr.bf16.mxu0 %v2767_v16 }
  0xad   : > { %2521 = vmatmul.mubr.bf16.gmra.mxu0 %v2768_v17 }
 0x155   : > { %v2510_v22 = vpop.f32.mrf.mxu0 }
 0x156   : > { %v829_v30 = vadd.f32 %v2510_v22, %v2306_v25 }
 0x157   : > { %v820_v23 = vpop.f32.mrf.mxu0 }
 0x158   : > { %v821_v28 = vadd.f32 %v2306_v25, %v820_v23 }
 0x159   : > { %v2511_v24 = vpop.f32.mrf.mxu0 }
 0x15a   : > { %v832_v26 = vadd.f32 %v2511_v24, %v2306_v25 }
 0x15b   : > { %v823_v27 = vpop.f32.mrf.mxu0 }
 0x15c   : > { %v824_v29 = vadd.f32 %v2306_v25, %v823_v27  ;;  %v884_v33 = vpack.c.bf16 %v832_v26, %v829_v30 }
 0x15d   : > { %v2514_v31 = vpop.f32.mrf.mxu0 }
 0x15e   : > { %v883_v32 = vpack.c.bf16 %v824_v29, %v821_v28  ;;  %v845_v41 = vadd.f32 %v2514_v31, %v2306_v25 }
 0x15f   : > { %v836_v34 = vpop.f32.mrf.mxu0 }
 0x160   : > { %2532 = vmatprep.mubr.msk.bf16.mxu1 %vm930_vm0, %v883_v32  ;;  %v837_v39 = vadd.f32 %v2306_v25, %v836_v34 }
 0x161   : > { %v2515_v36 = vpop.f32.mrf.mxu0  ;;  %2533 = vmatmul.mubr.msk.bf16.vlgmr.msra.gmra.mxu1 %vm930_vm0, %v884_v33 }
 0x162   : > { %2549 = vmatpush3.bf16.msra.mxu1 %v2773_v21  ;;  %v848_v37 = vadd.f32 %v2515_v36, %v2306_v25 }
 0x163   : > { %v839_v38 = vpop.f32.mrf.mxu0  ;;  %2550 = vmatprep.subr.bf16.mxu1 %v2774_v35 }
 0x164   : > { %v840_v40 = vadd.f32 %v2306_v25, %v839_v38  ;;  %v886_v44 = vpack.c.bf16 %v848_v37, %v845_v41 }
 0x165   : > { %v2518_v42 = vpop.f32.mrf.mxu0 }
 0x166   : > { %v885_v43 = vpack.c.bf16 %v840_v40, %v837_v39  ;;  %2551 = vmatpush3.bf16.msra.mxu1 %v2774_v35  ;;  %v861_v51 = vadd.f32 %v2518_v42, %v2306_v25 }
 0x167   : > { %v852_v45 = vpop.f32.mrf.mxu0  ;;  %2668 = vmatprep.subr.bf16.mxu1 %v2775_v0 }
 0x168   : > { %2536 = vmatprep.mubr.msk.bf16.mxu1 %vm930_vm0, %v885_v43  ;;  %v853_v49 = vadd.f32 %v2306_v25, %v852_v45 }
 0x169   : > { %v2519_v46 = vpop.f32.mrf.mxu0  ;;  %2537 = vmatmul.mubr.msk.bf16.gmra.mxu1 %vm930_vm0, %v886_v44 }
 0x16a   : > { %v864_v47 = vadd.f32 %v2519_v46, %v2306_v25 }
 0x16b   : > { %v855_v48 = vpop.f32.mrf.mxu0 }
 0x16c   : > { %v856_v50 = vadd.f32 %v2306_v25, %v855_v48  ;;  %v888_v54 = vpack.c.bf16 %v864_v47, %v861_v51 }
 0x16d   : > { %v2522_v52 = vpop.f32.mrf.mxu0 }
 0x16e   : > { %v887_v53 = vpack.c.bf16 %v856_v50, %v853_v49  ;;  %v877_v61 = vadd.f32 %v2522_v52, %v2306_v25 }
 0x16f   : > { %v868_v55 = vpop.f32.mrf.mxu0 }
 0x170   : > { %2540 = vmatprep.mubr.msk.bf16.mxu1 %vm930_vm0, %v887_v53  ;;  %v869_v59 = vadd.f32 %v2306_v25, %v868_v55 }
 0x171   : > { %v2523_v56 = vpop.f32.mrf.mxu0  ;;  %2541 = vmatmul.mubr.msk.bf16.gmra.mxu1 %vm930_vm0, %v888_v54 }
 0x172   : > { %v880_v57 = vadd.f32 %v2523_v56, %v2306_v25 }
 0x173   : > { %v871_v58 = vpop.f32.mrf.mxu0 }
 0x174   : > { %v872_v60 = vadd.f32 %v2306_v25, %v871_v58  ;;  %v890_v63 = vpack.c.bf16 %v880_v57, %v877_v61  ;;  %v2336_v61 = vld [vmem:[#allocation7] ss:$0 sm:$0xff] }
 0x176   : > { %v889_v62 = vpack.c.bf16 %v872_v60, %v869_v59 }
 0x178   : > { %2544 = vmatprep.mubr.msk.bf16.mxu1 %vm930_vm0, %v889_v62 }
 0x179   : > { %2545 = vmatmul.mubr.msk.bf16.gmra.mxu1 %vm930_vm0, %v890_v63 }
 0x221   : > { %v2534_v2 = vpop.f32.mrf.mxu1 }
 0x222   : > { %v998_v8 = vadd.f32 %v2534_v2, %v2323_v4 }
 0x223   : > { %v989_v3 = vpop.f32.mrf.mxu1 }
 0x224   : > { %v990_v6 = vadd.f32 %v2323_v4, %v989_v3  ;;  %v1054_v15 = vmax.f32 %v998_v8, 0.0 }
 0x225   : > { %v2535_v5 = vpop.f32.mrf.mxu1 }
 0x226   : > { %v1001_v7 = vadd.f32 %v2535_v5, %v2323_v4  ;;  %v1052_v13 = vmax.f32 %v990_v6, 0.0 }
 0x227   : > { %v992_v9 = vpop.f32.mrf.mxu1 }
 0x228   : > { %v993_v10 = vadd.f32 %v2323_v4, %v992_v9  ;;  %v1055_v11 = vmax.f32 %v1001_v7, 0.0 }
 0x229   : > { %v2538_v12 = vpop.f32.mrf.mxu1 }
 0x22a   : > { %v1053_v14 = vmax.f32 %v993_v10, 0.0  ;;  %v1069_v18 = vpack.c.bf16 %v1055_v11, %v1054_v15  ;;  %v1014_v22 = vadd.f32 %v2538_v12, %v2323_v4 }
 0x22b   : > { %v1005_v16 = vpop.f32.mrf.mxu1 }
 0x22c   : > { %v1068_v17 = vpack.c.bf16 %v1053_v14, %v1052_v13  ;;  %v1006_v20 = vadd.f32 %v2323_v4, %v1005_v16  ;;  %v1058_v29 = vmax.f32 %v1014_v22, 0.0 }
 0x22d   : > { %v2539_v19 = vpop.f32.mrf.mxu1 }
 0x22e   : > { %v1017_v21 = vadd.f32 %v2539_v19, %v2323_v4  ;;  %2552 = vmatprep.mubr.msk.bf16.mxu1 %vm1099_vm1, %v1068_v17  ;;  %v1056_v27 = vmax.f32 %v1006_v20, 0.0 }
 0x22f   : > { %v1008_v23 = vpop.f32.mrf.mxu1  ;;  %2553 = vmatmul.mubr.msk.bf16.vlgmr.msra.gmra.mxu1 %vm1099_vm1, %v1069_v18 }
 0x230   : > { %v1009_v24 = vadd.f32 %v2323_v4, %v1008_v23  ;;  %2670 = vmatpush3.bf16.msra.mxu1 %v2775_v0  ;;  %v1059_v25 = vmax.f32 %v1017_v21, 0.0 }
 0x231   : > { %v2542_v26 = vpop.f32.mrf.mxu1  ;;  %2669 = vmatprep.subr.bf16.mxu1 %v2776_v1 }
 0x232   : > { %v1057_v28 = vmax.f32 %v1009_v24, 0.0  ;;  %v1071_v32 = vpack.c.bf16 %v1059_v25, %v1058_v29  ;;  %v1030_v36 = vadd.f32 %v2542_v26, %v2323_v4 }
 0x233   : > { %v1021_v30 = vpop.f32.mrf.mxu1 }
 0x234   : > { %v1070_v31 = vpack.c.bf16 %v1057_v28, %v1056_v27  ;;  %2671 = vmatpush3.bf16.msra.mxu1 %v2776_v1  ;;  %v1022_v34 = vadd.f32 %v2323_v4, %v1021_v30  ;;  %v1062_v43 = vmax.f32 %v1030_v36, 0.0 }
 0x235   : > { %v2543_v33 = vpop.f32.mrf.mxu1 }
 0x236   : > { %v1033_v35 = vadd.f32 %v2543_v33, %v2323_v4  ;;  %2556 = vmatprep.mubr.msk.bf16.mxu1 %vm1099_vm1, %v1070_v31  ;;  %v1060_v41 = vmax.f32 %v1022_v34, 0.0 }
 0x237   : > { %v1024_v37 = vpop.f32.mrf.mxu1  ;;  %2557 = vmatmul.mubr.msk.bf16.gmra.mxu1 %vm1099_vm1, %v1071_v32 }
 0x238   : > { %v1025_v38 = vadd.f32 %v2323_v4, %v1024_v37  ;;  %v1063_v39 = vmax.f32 %v1033_v35, 0.0 }
 0x239   : > { %v2546_v40 = vpop.f32.mrf.mxu1 }
 0x23a   : > { %v1061_v42 = vmax.f32 %v1025_v38, 0.0  ;;  %v1073_v46 = vpack.c.bf16 %v1063_v39, %v1062_v43  ;;  %v1046_v50 = vadd.f32 %v2546_v40, %v2323_v4 }
 0x23b   : > { %v1037_v44 = vpop.f32.mrf.mxu1 }
 0x23c   : > { %v1072_v45 = vpack.c.bf16 %v1061_v42, %v1060_v41  ;;  %v1038_v48 = vadd.f32 %v2323_v4, %v1037_v44  ;;  %v1066_v56 = vmax.f32 %v1046_v50, 0.0 }
 0x23d   : > { %v2547_v47 = vpop.f32.mrf.mxu1 }
 0x23e   : > { %v1049_v49 = vadd.f32 %v2547_v47, %v2323_v4  ;;  %2560 = vmatprep.mubr.msk.bf16.mxu1 %vm1099_vm1, %v1072_v45  ;;  %v1064_v54 = vmax.f32 %v1038_v48, 0.0 }
 0x23f   : > { %v1040_v51 = vpop.f32.mrf.mxu1  ;;  %2561 = vmatmul.mubr.msk.bf16.gmra.mxu1 %vm1099_vm1, %v1073_v46 }
 0x240   : > { %v1041_v52 = vadd.f32 %v2323_v4, %v1040_v51  ;;  %v1067_v53 = vmax.f32 %v1049_v49, 0.0 }
 0x242   : > { %v1065_v55 = vmax.f32 %v1041_v52, 0.0  ;;  %v1075_v58 = vpack.c.bf16 %v1067_v53, %v1066_v56  ;;  %v2777_v52 = vld [vmem:[%s3487_s9 + $0x8] sm:$0xff]   ;;  %v2778_v53 = vld [vmem:[%s3487_s9] sm:$0xff]  }
 0x243   : > { %2588 = vmatprep.subr.bf16.mxu1 %v2777_v52 }
 0x244   : > { %v1074_v57 = vpack.c.bf16 %v1065_v55, %v1064_v54  ;;  %v2779_v54 = vld [vmem:[#allocation11 + $0x8] sm:$0xff]  }
 0x245   : > { %2608 = vmatprep.subr.bf16.mxu0 %v2779_v54 }
 0x246   : > { %2564 = vmatprep.mubr.msk.bf16.mxu1 %vm1099_vm1, %v1074_v57  ;;  %v2347_v57 = vld [vmem:[#allocation10] ss:$0 sm:$0xff] }
 0x247   : > { %2565 = vmatmul.mubr.msk.bf16.gmra.mxu1 %vm1099_vm1, %v1075_v58 }
 0x2ef   : > { %v2554_v59 = vpop.f32.mrf.mxu1 }
 0x2f0   : > { %v1167_v1 = vadd.f32 %v2554_v59, %v2336_v61 }
 0x2f1   : > { %v1158_v60 = vpop.f32.mrf.mxu1 }
 0x2f2   : > { %v1159_v63 = vadd.f32 %v2336_v61, %v1158_v60  ;;  %v1223_v8 = vmax.f32 %v1167_v1, 0.0 }
 0x2f3   : > { %v2555_v62 = vpop.f32.mrf.mxu1 }
 0x2f4   : > { %v1170_v0 = vadd.f32 %v2555_v62, %v2336_v61  ;;  %v1221_v6 = vmax.f32 %v1159_v63, 0.0 }
 0x2f5   : > { %v1161_v2 = vpop.f32.mrf.mxu1 }
 0x2f6   : > { %v1162_v3 = vadd.f32 %v2336_v61, %v1161_v2  ;;  %v1224_v4 = vmax.f32 %v1170_v0, 0.0 }
 0x2f7   : > { %v2558_v5 = vpop.f32.mrf.mxu1 }
 0x2f8   : > { %v1222_v7 = vmax.f32 %v1162_v3, 0.0  ;;  %v1238_v11 = vpack.c.bf16 %v1224_v4, %v1223_v8  ;;  %v1183_v15 = vadd.f32 %v2558_v5, %v2336_v61 }
 0x2f9   : > { %v1174_v9 = vpop.f32.mrf.mxu1 }
 0x2fa   : > { %v1237_v10 = vpack.c.bf16 %v1222_v7, %v1221_v6  ;;  %v1175_v13 = vadd.f32 %v2336_v61, %v1174_v9  ;;  %v1227_v22 = vmax.f32 %v1183_v15, 0.0 }
 0x2fb   : > { %v2559_v12 = vpop.f32.mrf.mxu1 }
 0x2fc   : > { %v1186_v14 = vadd.f32 %v2559_v12, %v2336_v61  ;;  %2572 = vmatprep.mubr.msk.bf16.mxu0 %vm1099_vm1, %v1237_v10  ;;  %v1225_v20 = vmax.f32 %v1175_v13, 0.0 }
 0x2fd   : > { %v1177_v16 = vpop.f32.mrf.mxu1  ;;  %2573 = vmatmul.mubr.msk.bf16.vlgmr.msra.gmra.mxu0 %vm1099_vm1, %v1238_v11 }
 0x2fe   : > { %v1178_v17 = vadd.f32 %v2336_v61, %v1177_v16  ;;  %v1228_v18 = vmax.f32 %v1186_v14, 0.0  ;;  %2609 = vmatpush3.bf16.msra.mxu0 %v2779_v54 }
 0x2ff   : > { %v2562_v19 = vpop.f32.mrf.mxu1 }
 0x300   : > { %v1226_v21 = vmax.f32 %v1178_v17, 0.0  ;;  %v1240_v25 = vpack.c.bf16 %v1228_v18, %v1227_v22  ;;  %v1199_v29 = vadd.f32 %v2562_v19, %v2336_v61 }
 0x301   : > { %v1190_v23 = vpop.f32.mrf.mxu1 }
 0x302   : > { %v1239_v24 = vpack.c.bf16 %v1226_v21, %v1225_v20  ;;  %v1191_v27 = vadd.f32 %v2336_v61, %v1190_v23  ;;  %v1231_v36 = vmax.f32 %v1199_v29, 0.0 }
 0x303   : > { %v2563_v26 = vpop.f32.mrf.mxu1 }
 0x304   : > { %v1202_v28 = vadd.f32 %v2563_v26, %v2336_v61  ;;  %2576 = vmatprep.mubr.msk.bf16.mxu0 %vm1099_vm1, %v1239_v24  ;;  %v1229_v34 = vmax.f32 %v1191_v27, 0.0 }
 0x305   : > { %v1193_v30 = vpop.f32.mrf.mxu1  ;;  %2577 = vmatmul.mubr.msk.bf16.gmra.mxu0 %vm1099_vm1, %v1240_v25 }
 0x306   : > { %v1194_v31 = vadd.f32 %v2336_v61, %v1193_v30  ;;  %v1232_v32 = vmax.f32 %v1202_v28, 0.0 }
 0x307   : > { %v2566_v33 = vpop.f32.mrf.mxu1 }
 0x308   : > { %v1230_v35 = vmax.f32 %v1194_v31, 0.0  ;;  %v1242_v39 = vpack.c.bf16 %v1232_v32, %v1231_v36  ;;  %v1215_v43 = vadd.f32 %v2566_v33, %v2336_v61 }
 0x309   : > { %v1206_v37 = vpop.f32.mrf.mxu1 }
 0x30a   : > { %v1241_v38 = vpack.c.bf16 %v1230_v35, %v1229_v34  ;;  %v1207_v41 = vadd.f32 %v2336_v61, %v1206_v37  ;;  %v1235_v49 = vmax.f32 %v1215_v43, 0.0 }
 0x30b   : > { %v2567_v40 = vpop.f32.mrf.mxu1 }
 0x30c   : > { %v1218_v42 = vadd.f32 %v2567_v40, %v2336_v61  ;;  %2580 = vmatprep.mubr.msk.bf16.mxu0 %vm1099_vm1, %v1241_v38  ;;  %v1233_v47 = vmax.f32 %v1207_v41, 0.0 }
 0x30d   : > { %v1209_v44 = vpop.f32.mrf.mxu1  ;;  %2581 = vmatmul.mubr.msk.bf16.gmra.mxu0 %vm1099_vm1, %v1242_v39 }
 0x30e   : > { %v1210_v45 = vadd.f32 %v2336_v61, %v1209_v44  ;;  %v1236_v46 = vmax.f32 %v1218_v42, 0.0 }
 0x310   : > { %v1234_v48 = vmax.f32 %v1210_v45, 0.0  ;;  %v1244_v51 = vpack.c.bf16 %v1236_v46, %v1235_v49  ;;  %v2781_v49 = vld [vmem:[#allocation13 + $0x8] sm:$0xff]  }
 0x312   : > { %v1243_v50 = vpack.c.bf16 %v1234_v48, %v1233_v47  ;;  %v2780_v48 = vld [vmem:[#allocation11] sm:$0xff]  }
 0x313   : > { %2610 = vmatprep.subr.bf16.mxu0 %v2780_v48 }
 0x314   : > { %2584 = vmatprep.mubr.msk.bf16.mxu1 %vm1099_vm1, %v1243_v50  ;;  %2611 = vmatpush3.bf16.msra.mxu0 %v2780_v48  ;;  %v2782_v50 = vld [vmem:[#allocation13] sm:$0xff]   ;;  %v2369_v48 = vld [vmem:[%s3490_s12] ss:$0 sm:$0xff] }
 0x315   : > { %2585 = vmatmul.mubr.msk.bf16.vlgmr.msra.gmra.mxu1 %vm1099_vm1, %v1244_v51 }
 0x316   : > { %2589 = vmatpush3.bf16.msra.mxu1 %v2777_v52 }
 0x317   : > { %2590 = vmatprep.subr.bf16.mxu1 %v2778_v53 }
 0x31a   : > { %2591 = vmatpush3.bf16.msra.mxu1 %v2778_v53  ;;  %v2358_v53 = vld [vmem:[%s3488_s10] ss:$0 sm:$0xff] }
 0x31b   : > { %2628 = vmatprep.subr.bf16.mxu1 %v2781_v49 }
 0x3bd   : > { %v2574_v55 = vpop.f32.mrf.mxu0 }
 0x3be   : > { %v1335_v61 = vadd.f32 %v2574_v55, %v2347_v57 }
 0x3bf   : > { %v1326_v56 = vpop.f32.mrf.mxu0 }
 0x3c0   : > { %v1327_v59 = vadd.f32 %v2347_v57, %v1326_v56  ;;  %v1391_v4 = vmax.f32 %v1335_v61, 0.0 }
 0x3c1   : > { %v2575_v58 = vpop.f32.mrf.mxu0 }
 0x3c2   : > { %v1338_v60 = vadd.f32 %v2575_v58, %v2347_v57  ;;  %v1389_v2 = vmax.f32 %v1327_v59, 0.0 }
 0x3c3   : > { %v1329_v62 = vpop.f32.mrf.mxu0 }
 0x3c4   : > { %v1330_v63 = vadd.f32 %v2347_v57, %v1329_v62  ;;  %v1392_v0 = vmax.f32 %v1338_v60, 0.0 }
 0x3c5   : > { %v2578_v1 = vpop.f32.mrf.mxu0 }
 0x3c6   : > { %v1390_v3 = vmax.f32 %v1330_v63, 0.0  ;;  %v1406_v7 = vpack.c.bf16 %v1392_v0, %v1391_v4  ;;  %v1351_v11 = vadd.f32 %v2578_v1, %v2347_v57 }
 0x3c7   : > { %v1342_v5 = vpop.f32.mrf.mxu0 }
 0x3c8   : > { %v1405_v6 = vpack.c.bf16 %v1390_v3, %v1389_v2  ;;  %v1343_v9 = vadd.f32 %v2347_v57, %v1342_v5  ;;  %v1395_v18 = vmax.f32 %v1351_v11, 0.0 }
 0x3c9   : > { %v2579_v8 = vpop.f32.mrf.mxu0 }
 0x3ca   : > { %v1354_v10 = vadd.f32 %v2579_v8, %v2347_v57  ;;  %2592 = vmatprep.mubr.msk.bf16.mxu1 %vm1099_vm1, %v1405_v6  ;;  %v1393_v16 = vmax.f32 %v1343_v9, 0.0 }
 0x3cb   : > { %v1345_v12 = vpop.f32.mrf.mxu0  ;;  %2593 = vmatmul.mubr.msk.bf16.vlgmr.msra.gmra.mxu1 %vm1099_vm1, %v1406_v7 }
 0x3cc   : > { %v1346_v13 = vadd.f32 %v2347_v57, %v1345_v12  ;;  %v1396_v14 = vmax.f32 %v1354_v10, 0.0  ;;  %2629 = vmatpush3.bf16.msra.mxu1 %v2781_v49 }
 0x3cd   : > { %v2582_v15 = vpop.f32.mrf.mxu0  ;;  %2630 = vmatprep.subr.bf16.mxu1 %v2782_v50 }
 0x3ce   : > { %v1394_v17 = vmax.f32 %v1346_v13, 0.0  ;;  %v1408_v21 = vpack.c.bf16 %v1396_v14, %v1395_v18  ;;  %v1367_v25 = vadd.f32 %v2582_v15, %v2347_v57 }
 0x3cf   : > { %v1358_v19 = vpop.f32.mrf.mxu0 }
 0x3d0   : > { %v1407_v20 = vpack.c.bf16 %v1394_v17, %v1393_v16  ;;  %v1359_v23 = vadd.f32 %v2347_v57, %v1358_v19  ;;  %v1399_v32 = vmax.f32 %v1367_v25, 0.0  ;;  %2631 = vmatpush3.bf16.msra.mxu1 %v2782_v50 }
 0x3d1   : > { %v2583_v22 = vpop.f32.mrf.mxu0 }
 0x3d2   : > { %v1370_v24 = vadd.f32 %v2583_v22, %v2347_v57  ;;  %2596 = vmatprep.mubr.msk.bf16.mxu1 %vm1099_vm1, %v1407_v20  ;;  %v1397_v30 = vmax.f32 %v1359_v23, 0.0 }
 0x3d3   : > { %v1361_v26 = vpop.f32.mrf.mxu0  ;;  %2597 = vmatmul.mubr.msk.bf16.gmra.mxu1 %vm1099_vm1, %v1408_v21 }
 0x3d4   : > { %v1362_v27 = vadd.f32 %v2347_v57, %v1361_v26  ;;  %v1400_v28 = vmax.f32 %v1370_v24, 0.0 }
 0x3d5   : > { %v2586_v29 = vpop.f32.mrf.mxu1 }
 0x3d6   : > { %v1398_v31 = vmax.f32 %v1362_v27, 0.0  ;;  %v1410_v35 = vpack.c.bf16 %v1400_v28, %v1399_v32  ;;  %v1383_v39 = vadd.f32 %v2586_v29, %v2347_v57 }
 0x3d7   : > { %v1374_v33 = vpop.f32.mrf.mxu1 }
 0x3d8   : > { %v1409_v34 = vpack.c.bf16 %v1398_v31, %v1397_v30  ;;  %v1375_v37 = vadd.f32 %v2347_v57, %v1374_v33  ;;  %v1403_v45 = vmax.f32 %v1383_v39, 0.0 }
 0x3d9   : > { %v2587_v36 = vpop.f32.mrf.mxu1 }
 0x3da   : > { %v1386_v38 = vadd.f32 %v2587_v36, %v2347_v57  ;;  %2600 = vmatprep.mubr.msk.bf16.mxu1 %vm1099_vm1, %v1409_v34  ;;  %v1401_v43 = vmax.f32 %v1375_v37, 0.0 }
 0x3db   : > { %v1377_v40 = vpop.f32.mrf.mxu1  ;;  %2601 = vmatmul.mubr.msk.bf16.gmra.mxu1 %vm1099_vm1, %v1410_v35 }
 0x3dc   : > { %v1378_v41 = vadd.f32 %v2347_v57, %v1377_v40  ;;  %v1404_v42 = vmax.f32 %v1386_v38, 0.0 }
 0x3de   : > { %v1402_v44 = vmax.f32 %v1378_v41, 0.0  ;;  %v1412_v47 = vpack.c.bf16 %v1404_v42, %v1403_v45  ;;  %v2784_v45 = vld [vmem:[%s3493_s15] sm:$0xff]  }
 0x3e0   : > { %v1411_v46 = vpack.c.bf16 %v1402_v44, %v1401_v43  ;;  %v2783_v44 = vld [vmem:[%s3493_s15 + $0x8] sm:$0xff]  }
 0x3e1   : > { %2648 = vmatprep.subr.bf16.mxu0 %v2783_v44 }
 0x3e2   : > { %2604 = vmatprep.mubr.msk.bf16.mxu1 %vm1099_vm1, %v1411_v46 }
 0x3e3   : > { %2605 = vmatmul.mubr.msk.bf16.gmra.mxu1 %vm1099_vm1, %v1412_v47 }
 0x48b   : > { %v2594_v51 = vpop.f32.mrf.mxu1 }
 0x48c   : > { %v1503_v57 = vadd.f32 %v2594_v51, %v2358_v53 }
 0x48d   : > { %v1494_v52 = vpop.f32.mrf.mxu1 }
 0x48e   : > { %v1495_v55 = vadd.f32 %v2358_v53, %v1494_v52  ;;  %v1559_v0 = vmax.f32 %v1503_v57, 0.0 }
 0x48f   : > { %v2595_v54 = vpop.f32.mrf.mxu1 }
 0x490   : > { %v1506_v56 = vadd.f32 %v2595_v54, %v2358_v53  ;;  %v1557_v62 = vmax.f32 %v1495_v55, 0.0 }
 0x491   : > { %v1497_v58 = vpop.f32.mrf.mxu1 }
 0x492   : > { %v1498_v59 = vadd.f32 %v2358_v53, %v1497_v58  ;;  %v1560_v60 = vmax.f32 %v1506_v56, 0.0 }
 0x493   : > { %v2598_v61 = vpop.f32.mrf.mxu1 }
 0x494   : > { %v1558_v63 = vmax.f32 %v1498_v59, 0.0  ;;  %v1574_v3 = vpack.c.bf16 %v1560_v60, %v1559_v0  ;;  %v1519_v7 = vadd.f32 %v2598_v61, %v2358_v53 }
 0x495   : > { %v1510_v1 = vpop.f32.mrf.mxu1 }
 0x496   : > { %v1573_v2 = vpack.c.bf16 %v1558_v63, %v1557_v62  ;;  %v1511_v5 = vadd.f32 %v2358_v53, %v1510_v1  ;;  %v1563_v14 = vmax.f32 %v1519_v7, 0.0 }
 0x497   : > { %v2599_v4 = vpop.f32.mrf.mxu1 }
 0x498   : > { %v1522_v6 = vadd.f32 %v2599_v4, %v2358_v53  ;;  %2612 = vmatprep.mubr.msk.bf16.mxu0 %vm1099_vm1, %v1573_v2  ;;  %v1561_v12 = vmax.f32 %v1511_v5, 0.0 }
 0x499   : > { %v1513_v8 = vpop.f32.mrf.mxu1  ;;  %2613 = vmatmul.mubr.msk.bf16.vlgmr.msra.gmra.mxu0 %vm1099_vm1, %v1574_v3 }
 0x49a   : > { %v1514_v9 = vadd.f32 %v2358_v53, %v1513_v8  ;;  %v1564_v10 = vmax.f32 %v1522_v6, 0.0  ;;  %2649 = vmatpush3.bf16.msra.mxu0 %v2783_v44 }
 0x49b   : > { %v2602_v11 = vpop.f32.mrf.mxu1  ;;  %2650 = vmatprep.subr.bf16.mxu0 %v2784_v45 }
 0x49c   : > { %v1562_v13 = vmax.f32 %v1514_v9, 0.0  ;;  %v1576_v17 = vpack.c.bf16 %v1564_v10, %v1563_v14  ;;  %v1535_v21 = vadd.f32 %v2602_v11, %v2358_v53 }
 0x49d   : > { %v1526_v15 = vpop.f32.mrf.mxu1 }
 0x49e   : > { %v1575_v16 = vpack.c.bf16 %v1562_v13, %v1561_v12  ;;  %v1527_v19 = vadd.f32 %v2358_v53, %v1526_v15  ;;  %v1567_v28 = vmax.f32 %v1535_v21, 0.0  ;;  %2651 = vmatpush3.bf16.msra.mxu0 %v2784_v45 }
 0x49f   : > { %v2603_v18 = vpop.f32.mrf.mxu1 }
 0x4a0   : > { %v1538_v20 = vadd.f32 %v2603_v18, %v2358_v53  ;;  %2616 = vmatprep.mubr.msk.bf16.mxu0 %vm1099_vm1, %v1575_v16  ;;  %v1565_v26 = vmax.f32 %v1527_v19, 0.0 }
 0x4a1   : > { %v1529_v22 = vpop.f32.mrf.mxu1  ;;  %2617 = vmatmul.mubr.msk.bf16.gmra.mxu0 %vm1099_vm1, %v1576_v17 }
 0x4a2   : > { %v1530_v23 = vadd.f32 %v2358_v53, %v1529_v22  ;;  %v1568_v24 = vmax.f32 %v1538_v20, 0.0 }
 0x4a3   : > { %v2606_v25 = vpop.f32.mrf.mxu1 }
 0x4a4   : > { %v1566_v27 = vmax.f32 %v1530_v23, 0.0  ;;  %v1578_v31 = vpack.c.bf16 %v1568_v24, %v1567_v28  ;;  %v1551_v35 = vadd.f32 %v2606_v25, %v2358_v53 }
 0x4a5   : > { %v1542_v29 = vpop.f32.mrf.mxu1 }
 0x4a6   : > { %v1577_v30 = vpack.c.bf16 %v1566_v27, %v1565_v26  ;;  %v1543_v33 = vadd.f32 %v2358_v53, %v1542_v29  ;;  %v1571_v41 = vmax.f32 %v1551_v35, 0.0 }
 0x4a7   : > { %v2607_v32 = vpop.f32.mrf.mxu1 }
 0x4a8   : > { %v1554_v34 = vadd.f32 %v2607_v32, %v2358_v53  ;;  %2620 = vmatprep.mubr.msk.bf16.mxu0 %vm1099_vm1, %v1577_v30  ;;  %v1569_v39 = vmax.f32 %v1543_v33, 0.0 }
 0x4a9   : > { %v1545_v36 = vpop.f32.mrf.mxu1  ;;  %2621 = vmatmul.mubr.msk.bf16.gmra.mxu0 %vm1099_vm1, %v1578_v31 }
 0x4aa   : > { %v1546_v37 = vadd.f32 %v2358_v53, %v1545_v36  ;;  %v1572_v38 = vmax.f32 %v1554_v34, 0.0 }
 0x4ac   : > { %v1570_v40 = vmax.f32 %v1546_v37, 0.0  ;;  %v1580_v43 = vpack.c.bf16 %v1572_v38, %v1571_v41  ;;  %v2380_v41 = vld [vmem:[%s3492_s14] ss:$0 sm:$0xff] }
 0x4ae   : > { %v1579_v42 = vpack.c.bf16 %v1570_v40, %v1569_v39 }
 0x4b0   : > { %2624 = vmatprep.mubr.msk.bf16.mxu0 %vm1099_vm1, %v1579_v42 }
 0x4b1   : > { %2625 = vmatmul.mubr.msk.bf16.gmra.mxu0 %vm1099_vm1, %v1580_v43 }
 0x559   : > { %v2614_v46 = vpop.f32.mrf.mxu0 }
 0x55a   : > { %v1671_v52 = vadd.f32 %v2614_v46, %v2369_v48 }
 0x55b   : > { %v1662_v47 = vpop.f32.mrf.mxu0 }
 0x55c   : > { %v1663_v50 = vadd.f32 %v2369_v48, %v1662_v47  ;;  %v1727_v59 = vmax.f32 %v1671_v52, 0.0 }
 0x55d   : > { %v2615_v49 = vpop.f32.mrf.mxu0 }
 0x55e   : > { %v1674_v51 = vadd.f32 %v2615_v49, %v2369_v48  ;;  %v1725_v57 = vmax.f32 %v1663_v50, 0.0 }
 0x55f   : > { %v1665_v53 = vpop.f32.mrf.mxu0 }
 0x560   : > { %v1666_v54 = vadd.f32 %v2369_v48, %v1665_v53  ;;  %v1728_v55 = vmax.f32 %v1674_v51, 0.0 }
 0x561   : > { %v2618_v56 = vpop.f32.mrf.mxu0 }
 0x562   : > { %v1726_v58 = vmax.f32 %v1666_v54, 0.0  ;;  %v1742_v62 = vpack.c.bf16 %v1728_v55, %v1727_v59  ;;  %v1687_v2 = vadd.f32 %v2618_v56, %v2369_v48 }
 0x563   : > { %v1678_v60 = vpop.f32.mrf.mxu0 }
 0x564   : > { %v1741_v61 = vpack.c.bf16 %v1726_v58, %v1725_v57  ;;  %v1679_v0 = vadd.f32 %v2369_v48, %v1678_v60  ;;  %v1731_v9 = vmax.f32 %v1687_v2, 0.0 }
 0x565   : > { %v2619_v63 = vpop.f32.mrf.mxu0 }
 0x566   : > { %v1690_v1 = vadd.f32 %v2619_v63, %v2369_v48  ;;  %2632 = vmatprep.mubr.msk.bf16.mxu1 %vm1099_vm1, %v1741_v61  ;;  %v1729_v7 = vmax.f32 %v1679_v0, 0.0 }
 0x567   : > { %v1681_v3 = vpop.f32.mrf.mxu0  ;;  %2633 = vmatmul.mubr.msk.bf16.vlgmr.msra.gmra.mxu1 %vm1099_vm1, %v1742_v62 }
 0x568   : > { %v1682_v4 = vadd.f32 %v2369_v48, %v1681_v3  ;;  %v1732_v5 = vmax.f32 %v1690_v1, 0.0 }
 0x569   : > { %v2622_v6 = vpop.f32.mrf.mxu0 }
 0x56a   : > { %v1730_v8 = vmax.f32 %v1682_v4, 0.0  ;;  %v1744_v12 = vpack.c.bf16 %v1732_v5, %v1731_v9  ;;  %v1703_v16 = vadd.f32 %v2622_v6, %v2369_v48 }
 0x56b   : > { %v1694_v10 = vpop.f32.mrf.mxu0 }
 0x56c   : > { %v1743_v11 = vpack.c.bf16 %v1730_v8, %v1729_v7  ;;  %v1695_v14 = vadd.f32 %v2369_v48, %v1694_v10  ;;  %v1735_v23 = vmax.f32 %v1703_v16, 0.0 }
 0x56d   : > { %v2623_v13 = vpop.f32.mrf.mxu0 }
 0x56e   : > { %v1706_v15 = vadd.f32 %v2623_v13, %v2369_v48  ;;  %2636 = vmatprep.mubr.msk.bf16.mxu1 %vm1099_vm1, %v1743_v11  ;;  %v1733_v21 = vmax.f32 %v1695_v14, 0.0 }
 0x56f   : > { %v1697_v17 = vpop.f32.mrf.mxu0  ;;  %2637 = vmatmul.mubr.msk.bf16.gmra.mxu1 %vm1099_vm1, %v1744_v12 }
 0x570   : > { %v1698_v18 = vadd.f32 %v2369_v48, %v1697_v17  ;;  %v1736_v19 = vmax.f32 %v1706_v15, 0.0 }
 0x571   : > { %v2626_v20 = vpop.f32.mrf.mxu0 }
 0x572   : > { %v1734_v22 = vmax.f32 %v1698_v18, 0.0  ;;  %v1746_v26 = vpack.c.bf16 %v1736_v19, %v1735_v23  ;;  %v1719_v30 = vadd.f32 %v2626_v20, %v2369_v48 }
 0x573   : > { %v1710_v24 = vpop.f32.mrf.mxu0 }
 0x574   : > { %v1745_v25 = vpack.c.bf16 %v1734_v22, %v1733_v21  ;;  %v1711_v28 = vadd.f32 %v2369_v48, %v1710_v24  ;;  %v1739_v36 = vmax.f32 %v1719_v30, 0.0 }
 0x575   : > { %v2627_v27 = vpop.f32.mrf.mxu0 }
 0x576   : > { %v1722_v29 = vadd.f32 %v2627_v27, %v2369_v48  ;;  %2640 = vmatprep.mubr.msk.bf16.mxu1 %vm1099_vm1, %v1745_v25  ;;  %v1737_v34 = vmax.f32 %v1711_v28, 0.0 }
 0x577   : > { %v1713_v31 = vpop.f32.mrf.mxu0  ;;  %2641 = vmatmul.mubr.msk.bf16.gmra.mxu1 %vm1099_vm1, %v1746_v26 }
 0x578   : > { %v1714_v32 = vadd.f32 %v2369_v48, %v1713_v31  ;;  %v1740_v33 = vmax.f32 %v1722_v29, 0.0 }
 0x57a   : > { %v1738_v35 = vmax.f32 %v1714_v32, 0.0  ;;  %v1748_v38 = vpack.c.bf16 %v1740_v33, %v1739_v36  ;;  %v3419_v32 = vld [vmem:[#allocation2] ss:$0 sm:$0xff] }
 0x57c   : > { %v1747_v37 = vpack.c.bf16 %v1738_v35, %v1737_v34 }
 0x57e   : > { %2644 = vmatprep.mubr.msk.bf16.mxu1 %vm1099_vm1, %v1747_v37 }
 0x57f   : > { %2645 = vmatmul.mubr.msk.bf16.gmra.mxu1 %vm1099_vm1, %v1748_v38 }
 0x627   : > { %v2634_v39 = vpop.f32.mrf.mxu1 }
 0x628   : > { %v1839_v45 = vadd.f32 %v2634_v39, %v2380_v41 }
 0x629   : > { %v1830_v40 = vpop.f32.mrf.mxu1 }
 0x62a   : > { %v1831_v43 = vadd.f32 %v2380_v41, %v1830_v40  ;;  %v1895_v52 = vmax.f32 %v1839_v45, 0.0 }
 0x62b   : > { %v2635_v42 = vpop.f32.mrf.mxu1 }
 0x62c   : > { %v1842_v44 = vadd.f32 %v2635_v42, %v2380_v41  ;;  %v1893_v50 = vmax.f32 %v1831_v43, 0.0 }
 0x62d   : > { %v1833_v46 = vpop.f32.mrf.mxu1 }
 0x62e   : > { %v1834_v47 = vadd.f32 %v2380_v41, %v1833_v46  ;;  %v1896_v48 = vmax.f32 %v1842_v44, 0.0 }
 0x62f   : > { %v2638_v49 = vpop.f32.mrf.mxu1 }
 0x630   : > { %v1894_v51 = vmax.f32 %v1834_v47, 0.0  ;;  %v1910_v55 = vpack.c.bf16 %v1896_v48, %v1895_v52  ;;  %v1855_v59 = vadd.f32 %v2638_v49, %v2380_v41 }
 0x631   : > { %v1846_v53 = vpop.f32.mrf.mxu1 }
 0x632   : > { %v1909_v54 = vpack.c.bf16 %v1894_v51, %v1893_v50  ;;  %v1847_v57 = vadd.f32 %v2380_v41, %v1846_v53  ;;  %v1899_v2 = vmax.f32 %v1855_v59, 0.0 }
 0x633   : > { %v2639_v56 = vpop.f32.mrf.mxu1 }
 0x634   : > { %v1858_v58 = vadd.f32 %v2639_v56, %v2380_v41  ;;  %2652 = vmatprep.mubr.msk.bf16.mxu0 %vm1099_vm1, %v1909_v54  ;;  %v1897_v0 = vmax.f32 %v1847_v57, 0.0 }
 0x635   : > { %v1849_v60 = vpop.f32.mrf.mxu1  ;;  %2653 = vmatmul.mubr.msk.bf16.vlgmr.msra.gmra.mxu0 %vm1099_vm1, %v1910_v55 }
 0x636   : > { %v1850_v61 = vadd.f32 %v2380_v41, %v1849_v60  ;;  %v1900_v62 = vmax.f32 %v1858_v58, 0.0 }
 0x637   : > { %v2642_v63 = vpop.f32.mrf.mxu1 }
 0x638   : > { %v1898_v1 = vmax.f32 %v1850_v61, 0.0  ;;  %v1912_v5 = vpack.c.bf16 %v1900_v62, %v1899_v2  ;;  %v1871_v9 = vadd.f32 %v2642_v63, %v2380_v41 }
 0x639   : > { %v1862_v3 = vpop.f32.mrf.mxu1 }
 0x63a   : > { %v1911_v4 = vpack.c.bf16 %v1898_v1, %v1897_v0  ;;  %v1863_v7 = vadd.f32 %v2380_v41, %v1862_v3  ;;  %v1903_v16 = vmax.f32 %v1871_v9, 0.0 }
 0x63b   : > { %v2643_v6 = vpop.f32.mrf.mxu1 }
 0x63c   : > { %v1874_v8 = vadd.f32 %v2643_v6, %v2380_v41  ;;  %2656 = vmatprep.mubr.msk.bf16.mxu0 %vm1099_vm1, %v1911_v4  ;;  %v1901_v14 = vmax.f32 %v1863_v7, 0.0 }
 0x63d   : > { %v1865_v10 = vpop.f32.mrf.mxu1  ;;  %2657 = vmatmul.mubr.msk.bf16.gmra.mxu0 %vm1099_vm1, %v1912_v5 }
 0x63e   : > { %v1866_v11 = vadd.f32 %v2380_v41, %v1865_v10  ;;  %v1904_v12 = vmax.f32 %v1874_v8, 0.0 }
 0x63f   : > { %v2646_v13 = vpop.f32.mrf.mxu1 }
 0x640   : > { %v1902_v15 = vmax.f32 %v1866_v11, 0.0  ;;  %v1914_v19 = vpack.c.bf16 %v1904_v12, %v1903_v16  ;;  %v1887_v23 = vadd.f32 %v2646_v13, %v2380_v41 }
 0x641   : > { %v1878_v17 = vpop.f32.mrf.mxu1 }
 0x642   : > { %v1913_v18 = vpack.c.bf16 %v1902_v15, %v1901_v14  ;;  %v1879_v21 = vadd.f32 %v2380_v41, %v1878_v17  ;;  %v1907_v29 = vmax.f32 %v1887_v23, 0.0 }
 0x643   : > { %v2647_v20 = vpop.f32.mrf.mxu1 }
 0x644   : > { %v1890_v22 = vadd.f32 %v2647_v20, %v2380_v41  ;;  %2660 = vmatprep.mubr.msk.bf16.mxu0 %vm1099_vm1, %v1913_v18  ;;  %v1905_v27 = vmax.f32 %v1879_v21, 0.0 }
 0x645   : > { %v1881_v24 = vpop.f32.mrf.mxu1  ;;  %2661 = vmatmul.mubr.msk.bf16.gmra.mxu0 %vm1099_vm1, %v1914_v19 }
 0x646   : > { %v1882_v25 = vadd.f32 %v2380_v41, %v1881_v24  ;;  %v1908_v26 = vmax.f32 %v1890_v22, 0.0 }
 0x648   : > { %v1906_v28 = vmax.f32 %v1882_v25, 0.0  ;;  %v1916_v31 = vpack.c.bf16 %v1908_v26, %v1907_v29 }
 0x64a   : > { %v1915_v30 = vpack.c.bf16 %v1906_v28, %v1905_v27 }
 0x64c   : > { %2664 = vmatprep.mubr.msk.bf16.mxu0 %vm1099_vm1, %v1915_v30 }
 0x64d   : > { %2665 = vmatmul.mubr.msk.bf16.gmra.mxu0 %vm1099_vm1, %v1916_v31 }
 0x6f5   : > { %v2654_v33 = vpop.f32.mrf.mxu0 }
 0x6f6   : > { %v2007_v34 = vadd.f32 %v2654_v33, %v3419_v32 }
 0x6f7   : > { %v1998_v35 = vpop.f32.mrf.mxu0 }
 0x6f8   : > { %v2063_v36 = vsub.f32 0.0, %v2007_v34  ;;  %v1999_v37 = vadd.f32 %v3419_v32, %v1998_v35 }
 0x6f9   : > { %v2655_v38 = vpop.f32.mrf.mxu0 }
 0x6fa   : > { %v2081_v39 = vmul.f32 1.442695, %v2063_v36  ;;  %v2061_v40 = vsub.f32 0.0, %v1999_v37  ;;  %v2010_v41 = vadd.f32 %v2655_v38, %v3419_v32 }
 0x6fb   : > { %v2001_v42 = vpop.f32.mrf.mxu0 }
 0x6fc   : > { %2785 = vpow2.f32 %v2081_v39  ;;  %v2077_v43 = vmul.f32 1.442695, %v2061_v40  ;;  %v2064_v44 = vsub.f32 0.0, %v2010_v41  ;;  %v2002_v45 = vadd.f32 %v3419_v32, %v2001_v42 }
 0x6fd   : > { %v2658_v46 = vpop.f32.mrf.mxu0 }
 0x6fe   : > { %2787 = vpow2.f32 %v2077_v43  ;;  %v2083_v47 = vmul.f32 1.442695, %v2064_v44  ;;  %v2062_v48 = vsub.f32 0.0, %v2002_v45  ;;  %v2023_v49 = vadd.f32 %v2658_v46, %v3419_v32 }
 0x6ff   : > { %v2014_v50 = vpop.f32.mrf.mxu0 }
 0x700   : > { %2789 = vpow2.f32 %v2083_v47  ;;  %v2079_v51 = vmul.f32 1.442695, %v2062_v48  ;;  %v2067_v52 = vsub.f32 0.0, %v2023_v49  ;;  %v2015_v53 = vadd.f32 %v3419_v32, %v2014_v50 }
 0x701   : > { %v2659_v54 = vpop.f32.mrf.mxu0 }
 0x702   : > { %2791 = vpow2.f32 %v2079_v51  ;;  %v2089_v55 = vmul.f32 1.442695, %v2067_v52  ;;  %v2065_v56 = vsub.f32 0.0, %v2015_v53  ;;  %v2026_v57 = vadd.f32 %v2659_v54, %v3419_v32 }
 0x703   : > { %v2017_v58 = vpop.f32.mrf.mxu0 }
 0x704   : > { %2793 = vpow2.f32 %v2089_v55  ;;  %v2085_v59 = vmul.f32 1.442695, %v2065_v56  ;;  %v2068_v60 = vsub.f32 0.0, %v2026_v57  ;;  %v2018_v61 = vadd.f32 %v3419_v32, %v2017_v58 }
 0x705   : > { %v2662_v62 = vpop.f32.mrf.mxu0 }
 0x706   : > { %2795 = vpow2.f32 %v2085_v59  ;;  %v2091_v63 = vmul.f32 1.442695, %v2068_v60  ;;  %v2066_v0 = vsub.f32 0.0, %v2018_v61  ;;  %v2039_v1 = vadd.f32 %v2662_v62, %v3419_v32 }
 0x707   : > { %v2030_v2 = vpop.f32.mrf.mxu0 }
 0x708   : > { %2797 = vpow2.f32 %v2091_v63  ;;  %v2087_v3 = vmul.f32 1.442695, %v2066_v0  ;;  %v2071_v4 = vsub.f32 0.0, %v2039_v1  ;;  %v2031_v5 = vadd.f32 %v3419_v32, %v2030_v2 }
 0x709   : > { %v2786_v6 = vpop.eup %2785  ;;  %v2663_v7 = vpop.f32.mrf.mxu0 }
 0x70a   : > { %v2111_v8 = vadd.f32 1.0, %v2786_v6  ;;  %2799 = vpow2.f32 %v2087_v3  ;;  %v2097_v9 = vmul.f32 1.442695, %v2071_v4  ;;  %v2069_v10 = vsub.f32 0.0, %v2031_v5 }
 0x70b   : > { %v2788_v11 = vpop.eup %2787  ;;  %v2042_v12 = vadd.f32 %v2663_v7, %v3419_v32  ;;  %v2033_v13 = vpop.f32.mrf.mxu0 }
 0x70c   : > { %2801 = vrcp.f32 %v2111_v8  ;;  %v2109_v14 = vadd.f32 1.0, %v2788_v11  ;;  %v2093_v15 = vmul.f32 1.442695, %v2069_v10  ;;  %v2034_v16 = vadd.f32 %v3419_v32, %v2033_v13 }
 0x70d   : > { %v2790_v17 = vpop.eup %2789  ;;  %2803 = vpow2.f32 %v2097_v9  ;;  %v2072_v18 = vsub.f32 0.0, %v2042_v12  ;;  %v2666_v19 = vpop.f32.mrf.mxu0 }
 0x70e   : > { %2805 = vrcp.f32 %v2109_v14  ;;  %v2112_v20 = vadd.f32 1.0, %v2790_v17  ;;  %v2070_v21 = vsub.f32 0.0, %v2034_v16  ;;  %v2055_v22 = vadd.f32 %v2666_v19, %v3419_v32 }
 0x70f   : > { %v2792_v23 = vpop.eup %2791  ;;  %2807 = vpow2.f32 %v2093_v15  ;;  %v2099_v24 = vmul.f32 1.442695, %v2072_v18  ;;  %v2046_v25 = vpop.f32.mrf.mxu0 }
 0x710   : > { %2809 = vrcp.f32 %v2112_v20  ;;  %v2110_v26 = vadd.f32 1.0, %v2792_v23  ;;  %v2095_v27 = vmul.f32 1.442695, %v2070_v21  ;;  %v2075_v28 = vsub.f32 0.0, %v2055_v22 }
 0x711   : > { %v2794_v29 = vpop.eup %2793  ;;  %2811 = vpow2.f32 %v2099_v24  ;;  %v2047_v30 = vadd.f32 %v3419_v32, %v2046_v25  ;;  %v2667_v31 = vpop.f32.mrf.mxu0 }
 0x712   : > { %2813 = vrcp.f32 %v2110_v26  ;;  %v2115_v33 = vadd.f32 1.0, %v2794_v29  ;;  %v2105_v34 = vmul.f32 1.442695, %v2075_v28  ;;  %v2058_v35 = vadd.f32 %v2667_v31, %v3419_v32 }
 0x713   : > { %v2796_v36 = vpop.eup %2795  ;;  %2815 = vpow2.f32 %v2095_v27  ;;  %v2073_v37 = vsub.f32 0.0, %v2047_v30  ;;  %v2049_v38 = vpop.f32.mrf.mxu0 }
 0x714   : > { %2817 = vrcp.f32 %v2115_v33  ;;  %v2113_v39 = vadd.f32 1.0, %v2796_v36  ;;  %v2076_v40 = vsub.f32 0.0, %v2058_v35  ;;  %v2050_v41 = vadd.f32 %v3419_v32, %v2049_v38 }
 0x715   : > { %v2798_v42 = vpop.eup %2797  ;;  %2819 = vpow2.f32 %v2105_v34  ;;  %v2101_v43 = vmul.f32 1.442695, %v2073_v37 }
 0x716   : > { %2821 = vrcp.f32 %v2113_v39  ;;  %v2116_v44 = vadd.f32 1.0, %v2798_v42  ;;  %v2107_v45 = vmul.f32 1.442695, %v2076_v40  ;;  %v2074_v46 = vsub.f32 0.0, %v2050_v41 }
 0x717   : > { %v2800_v47 = vpop.eup %2799  ;;  %2823 = vpow2.f32 %v2101_v43 }
 0x718   : > { %2825 = vrcp.f32 %v2116_v44  ;;  %v2114_v48 = vadd.f32 1.0, %v2800_v47  ;;  %v2103_v32 = vmul.f32 1.442695, %v2074_v46 }
 0x719   : > { %v2802_v49 = vpop.eup %2801  ;;  %2827 = vpow2.f32 %v2107_v45 }
 0x71a   : > { %v2804_v50 = vpop.eup %2803  ;;  %2144 = vst.msk [vmem:[%s3441_s24 + $0x10] sm:$0xff] %vm2141_vm2, %v2802_v49  ;;  %2829 = vrcp.f32 %v2114_v48 }
 0x71b   : > { %v2806_v51 = vpop.eup %2805  ;;  %v2119_v52 = vadd.f32 1.0, %v2804_v50  ;;  %2831 = vpow2.f32 %v2103_v32 }
 0x71c   : > { %v2808_v53 = vpop.eup %2807  ;;  %2142 = vst.msk [vmem:[%s3441_s24] sm:$0xff] %vm2141_vm2, %v2806_v51 }
 0x71d   : > { %v2810_v54 = vpop.eup %2809  ;;  %2833 = vrcp.f32 %v2119_v52  ;;  %v2117_v55 = vadd.f32 1.0, %v2808_v53 }
 0x71e   : > { %v2812_v56 = vpop.eup %2811  ;;  %2145 = vst.msk [vmem:[%s3441_s24 + $0x18] sm:$0xff] %vm2141_vm2, %v2810_v54 }
 0x71f   : > { %v2814_v57 = vpop.eup %2813  ;;  %2835 = vrcp.f32 %v2117_v55  ;;  %v2120_v58 = vadd.f32 1.0, %v2812_v56 }
 0x720   : > { %v2816_v59 = vpop.eup %2815  ;;  %2143 = vst.msk [vmem:[%s3441_s24 + $0x8] sm:$0xff] %vm2141_vm2, %v2814_v57 }
 0x721   : > { %v2818_v60 = vpop.eup %2817  ;;  %2837 = vrcp.f32 %v2120_v58  ;;  %v2118_v61 = vadd.f32 1.0, %v2816_v59 }
 0x722   : > { %v2820_v62 = vpop.eup %2819  ;;  %2148 = vst.msk [vmem:[%s3441_s24 + $0x30] sm:$0xff] %vm2141_vm2, %v2818_v60 }
 0x723   : > { %v2822_v63 = vpop.eup %2821  ;;  %2839 = vrcp.f32 %v2118_v61  ;;  %v2123_v0 = vadd.f32 1.0, %v2820_v62 }
 0x724   : > { %v2824_v1 = vpop.eup %2823  ;;  %2146 = vst.msk [vmem:[%s3441_s24 + $0x20] sm:$0xff] %vm2141_vm2, %v2822_v63 }
 0x725   : > { %v2826_v2 = vpop.eup %2825  ;;  %2841 = vrcp.f32 %v2123_v0  ;;  %v2121_v3 = vadd.f32 1.0, %v2824_v1 }
 0x726   : > { %v2828_v4 = vpop.eup %2827  ;;  %2149 = vst.msk [vmem:[%s3441_s24 + $0x38] sm:$0xff] %vm2141_vm2, %v2826_v2 }
 0x727   : > { %v2830_v5 = vpop.eup %2829  ;;  %2843 = vrcp.f32 %v2121_v3  ;;  %v2124_v6 = vadd.f32 1.0, %v2828_v4 }
 0x728   : > { %v2832_v7 = vpop.eup %2831  ;;  %2147 = vst.msk [vmem:[%s3441_s24 + $0x28] sm:$0xff] %vm2141_vm2, %v2830_v5 }
 0x729   : > { %2845 = vrcp.f32 %v2124_v6  ;;  %v2122_v8 = vadd.f32 1.0, %v2832_v7 }
 0x72a   : > { %v2834_v9 = vpop.eup %2833 }
 0x72b   : > { %2152 = vst.msk [vmem:[%s3441_s24 + $0x50] sm:$0xff] %vm2141_vm2, %v2834_v9  ;;  %2847 = vrcp.f32 %v2122_v8 }
 0x72c   : > { %v2836_v10 = vpop.eup %2835 }
 0x72d   : > { %2150 = vst.msk [vmem:[%s3441_s24 + $0x40] sm:$0xff] %vm2141_vm2, %v2836_v10 }
 0x72e   : > { %v2838_v11 = vpop.eup %2837 }
 0x72f   : > { %2153 = vst.msk [vmem:[%s3441_s24 + $0x58] sm:$0xff] %vm2141_vm2, %v2838_v11 }
 0x730   : > { %v2840_v12 = vpop.eup %2839 }
 0x731   : > { %2151 = vst.msk [vmem:[%s3441_s24 + $0x48] sm:$0xff] %vm2141_vm2, %v2840_v12 }
 0x732   : > { %v2842_v13 = vpop.eup %2841 }
 0x733   : > { %2156 = vst.msk [vmem:[%s3441_s24 + $0x70] sm:$0xff] %vm2141_vm2, %v2842_v13 }
 0x734   : > { %v2844_v14 = vpop.eup %2843 }
 0x735   : > { %2154 = vst.msk [vmem:[%s3441_s24 + $0x60] sm:$0xff] %vm2141_vm2, %v2844_v14 }
 0x736   : > { %v2846_v15 = vpop.eup %2845 }
 0x737   : > { %2157 = vst.msk [vmem:[%s3441_s24 + $0x78] sm:$0xff] %vm2141_vm2, %v2846_v15 }
 0x738   : > { %v2848_v16 = vpop.eup %2847 }
 0x739   : > { %2155 = vst.msk [vmem:[%s3441_s24 + $0x68] sm:$0xff] %vm2141_vm2, %v2848_v16 }
 0x73a PF: > { %s33_s26 = sadd.s32 1, %s3053_s26  }
 0x73b   : > { %p30_p5 = scmp.ge.s32.totalorder %s33_s26, 4  }
 0x73d   :  { %32 = sbr.rel (!%p30_p5) target bundleno = 7 (0x7), region = 147 }
 0x742   :  { %2180 = vsyncpa [#allocation4], 1 }
 0x743   :  { %2182 = vsyncpa [#allocation4 + $0x1], 1 }
 0x744   :  { %2183 = vsyncpa [#allocation6], 1 }
 0x745   :  { %2184 = vsyncpa [#allocation9], 1 }
 0x746   :  { %2185 = vsyncpa [#allocation12], 1 }

</bundles_post_ra>
